<compile_context>
chip_gen: v5e
topology: v5e:2x2
jax: 0.10.0
libtpu: 0.0.40
codegen_flags: <defaults>
</compile_context>

<pallas_src>
import functools

import jax
import jax.numpy as jnp
from jax import lax
from jax.experimental import pallas as pl
from jax.experimental.pallas import tpu as pltpu


# --------------------------------------------------------------------------
# Kernel-side helpers
# --------------------------------------------------------------------------
def _row_taps_f32(x, H):
    """Row-shifted taps for a 3x3 conv in lane-dense layout.

    x: (N*H, L) f32 with rows ordered (n, h).  Returns (up, mid, down) where
    up[r] = x[r-1] (source row h-1) and down[r] = x[r+1] (source row h+1),
    with rows whose source falls outside its own image (h-1 < 0 or h+1 >= H)
    zeroed.  The shifts are XLU sublane rolls; the rows that wrap around the
    buffer (or cross an image boundary) are exactly the masked ones.
    """
    NH = x.shape[0]
    h = lax.broadcasted_iota(jnp.int32, (NH, 1), 0) % H
    up = jnp.where(h > 0, pltpu.roll(x, shift=1, axis=0), 0.0)
    down = jnp.where(h < H - 1, pltpu.roll(x, shift=NH - 1, axis=0), 0.0)
    return up, x, down


def _conv3x3_banded(x_f32, b_ref, H):
    """3x3 SAME conv as 3 W-banded MXU matmuls (one per kernel row dh).

    x_f32: (N*H, W*Ci) f32 lane-dense activation.
    b_ref: (3, W*Ci, W*Co) bf16 block-banded weights (width taps + zero
           padding folded into the matrix).  Returns f32 (N*H, W*Co).
    """
    taps = _row_taps_f32(x_f32, H)
    acc = None
    for dh in range(3):
        part = jnp.dot(taps[dh].astype(b_ref.dtype), b_ref[dh],
                       preferred_element_type=jnp.float32)
        acc = part if acc is None else acc + part
    return acc


def _bn_relu_folded(acc, gamma, beta, W, Cout, eps=1e-5):
    """Training-mode BatchNorm (batch stats, biased var) + ReLU, folded.

    acc: (N*H, W*Cout) f32 lane-dense; gamma/beta: (1, Cout) f32.
    Single-pass stats (sum, sum-of-squares) -> per-channel affine
    y = max(acc * a + b, 0) applied on the 128-lane-dense view.
    """
    NH = acc.shape[0]
    count = float(NH * W)

    s = jnp.sum(acc, axis=0, keepdims=True)           # (1, W*Cout) per-(w, c)
    ss = jnp.sum(acc * acc, axis=0, keepdims=True)    # (1, W*Cout)
    s_c = s[:, :Cout]
    ss_c = ss[:, :Cout]
    for w in range(1, W):                             # fold the W lane groups
        s_c = s_c + s[:, w * Cout:(w + 1) * Cout]
        ss_c = ss_c + ss[:, w * Cout:(w + 1) * Cout]

    mean = s_c / count
    var = ss_c / count - mean * mean                  # biased variance
    a_c = gamma * lax.rsqrt(var + eps)                # (1, Cout)
    b_c = beta - mean * a_c                           # (1, Cout)
    a_lane = jnp.concatenate([a_c] * W, axis=1)       # (1, W*Cout), lane = w*Cout + c
    b_lane = jnp.concatenate([b_c] * W, axis=1)
    return jnp.maximum(acc * a_lane + b_lane, 0.0)


def double_conv_kernel(x_ref, b1_ref, b2_ref, g1_ref, be1_ref, g2_ref, be2_ref,
                       o_ref, *, H, W, Cout):
    # x_ref : (N*H, W*Cin)         bf16 lane-dense raw input (no im2col)
    # b1_ref: (3, W*Cin,  W*Cout)  bf16 banded conv1 weights (per kernel row)
    # b2_ref: (3, W*Cout, W*Cout)  bf16 banded conv2 weights
    # g/be  : (1, Cout)            f32 BN affine params
    # o_ref : (N*H, W*Cout)        f32 lane-dense output (W*Cout == 128 here)
    x = x_ref[...].astype(jnp.float32)

    acc1 = _conv3x3_banded(x, b1_ref, H)                              # conv1
    y1 = _bn_relu_folded(acc1, g1_ref[...], be1_ref[...], W, Cout)    # BN1+ReLU

    acc2 = _conv3x3_banded(y1, b2_ref, H)                             # conv2
    y2 = _bn_relu_folded(acc2, g2_ref[...], be2_ref[...], W, Cout)    # BN2+ReLU

    o_ref[...] = y2.astype(o_ref.dtype)


# --------------------------------------------------------------------------
# Wrapper (layout plumbing only)
# --------------------------------------------------------------------------
def _band_weights(w_hwio, W):
    """Fold the width (dw) taps + zero padding of a 3x3 conv into a
    block-banded matmul operand.

    w_hwio: (3, 3, Ci, Co).  Returns (3, W*Ci, W*Co) with
    B[dh, w_in*Ci+ci, w_out*Co+co] = w[dh, w_in-w_out+1, ci, co] when
    |w_in - w_out| <= 1, and 0 otherwise.
    """
    _, _, Ci, Co = w_hwio.shape
    w_in = jnp.arange(W)[:, None]
    w_out = jnp.arange(W)[None, :]
    dw = w_in - w_out + 1                                   # (W, W)
    valid = (dw >= 0) & (dw <= 2)
    b = jnp.where(valid[None, :, :, None, None],
                  w_hwio[:, jnp.clip(dw, 0, 2)], 0.0)       # (3, W, W, Ci, Co)
    return jnp.transpose(b, (0, 1, 3, 2, 4)).reshape(3, W * Ci, W * Co)


def double_conv_fused(x_nhwc, w1, w2, gamma1, beta1, gamma2, beta2):
    """x_nhwc: (N,H,W,Cin) f32; w1: (3,3,Cin,Cout); w2: (3,3,Cout,Cout)."""
    N, H, W, Cin = x_nhwc.shape
    Cout = w1.shape[-1]
    NH = N * H

    # Raw input in lane-dense layout; weights as banded bf16 matmul operands.
    x2d = x_nhwc.reshape(NH, W * Cin).astype(jnp.bfloat16)
    b1 = _band_weights(w1, W).astype(jnp.bfloat16)          # (3, W*Cin,  W*Cout)
    b2 = _band_weights(w2, W).astype(jnp.bfloat16)          # (3, W*Cout, W*Cout)

    g1 = gamma1.reshape(1, Cout).astype(jnp.float32)
    be1 = beta1.reshape(1, Cout).astype(jnp.float32)
    g2 = gamma2.reshape(1, Cout).astype(jnp.float32)
    be2 = beta2.reshape(1, Cout).astype(jnp.float32)

    kernel = functools.partial(double_conv_kernel, H=H, W=W, Cout=Cout)

    out2d = pl.pallas_call(
        kernel,
        out_shape=jax.ShapeDtypeStruct((NH, W * Cout), jnp.float32),
        in_specs=[
            pl.BlockSpec((NH, W * Cin), lambda: (0, 0)),
            pl.BlockSpec((3, W * Cin, W * Cout), lambda: (0, 0, 0)),
            pl.BlockSpec((3, W * Cout, W * Cout), lambda: (0, 0, 0)),
            pl.BlockSpec((1, Cout), lambda: (0, 0)),
            pl.BlockSpec((1, Cout), lambda: (0, 0)),
            pl.BlockSpec((1, Cout), lambda: (0, 0)),
            pl.BlockSpec((1, Cout), lambda: (0, 0)),
        ],
        out_specs=pl.BlockSpec((NH, W * Cout), lambda: (0, 0)),
    )(x2d, b1, b2, g1, be1, g2, be2)

    return out2d.reshape(N, H, W, Cout)


@jax.jit
def double_conv_forward(x_nchw, params):
    # NCHW -> NHWC at the module boundary only; inside a U-Net chain the
    # activations would stay NHWC between DoubleConv blocks.
    x = jnp.transpose(x_nchw, (0, 2, 3, 1)).astype(jnp.float32)
    y = double_conv_fused(
        x,
        params["w1"], params["w2"],
        params["gamma1"], params["beta1"],
        params["gamma2"], params["beta2"],
    )
    return jnp.transpose(y, (0, 3, 1, 2))


def init_params(key, in_channel, out_channel):
    k1, k2 = jax.random.split(key, 2)
    # Deterministic synthetic init (kaiming-uniform-ish scale); not a checkpoint.
    # Conv biases are omitted: with training-mode BatchNorm right after each
    # conv, a per-channel bias cancels exactly in the mean subtraction.
    fan1 = in_channel * 9
    fan2 = out_channel * 9
    return {
        "w1": jax.random.uniform(
            k1, (3, 3, in_channel, out_channel), jnp.float32,
            -1.0 / jnp.sqrt(fan1), 1.0 / jnp.sqrt(fan1)),
        "gamma1": jnp.ones((out_channel,), jnp.float32),
        "beta1": jnp.zeros((out_channel,), jnp.float32),
        "w2": jax.random.uniform(
            k2, (3, 3, out_channel, out_channel), jnp.float32,
            -1.0 / jnp.sqrt(fan2), 1.0 / jnp.sqrt(fan2)),
        "gamma2": jnp.ones((out_channel,), jnp.float32),
        "beta2": jnp.zeros((out_channel,), jnp.float32),
    }


def _reference_double_conv(x_nhwc, params, eps=1e-5):
    """Pure-JAX f32 reference: conv -> train-mode BN -> ReLU, twice."""
    def conv_bn_relu(x, w, gamma, beta):
        y = lax.conv_general_dilated(
            x, w, window_strides=(1, 1), padding="SAME",
            dimension_numbers=("NHWC", "HWIO", "NHWC"))
        mean = jnp.mean(y, axis=(0, 1, 2), keepdims=True)
        var = jnp.mean((y - mean) ** 2, axis=(0, 1, 2), keepdims=True)
        y = (y - mean) * lax.rsqrt(var + eps) * gamma + beta
        return jnp.maximum(y, 0.0)

    y = conv_bn_relu(x_nhwc, params["w1"], params["gamma1"], params["beta1"])
    y = conv_bn_relu(y, params["w2"], params["gamma2"], params["beta2"])
    return y


if __name__ == "__main__":
    key = jax.random.PRNGKey(0)
    kx, kp = jax.random.split(key)

    N, Cin, H, W = 2, 4, 16, 16
    Cout = 8

    x = jax.random.normal(kx, (N, Cin, H, W), jnp.float32)  # NCHW like PyTorch
    params = init_params(kp, Cin, Cout)

    out = double_conv_forward(x, params)
    jax.block_until_ready(out)

    assert out.shape == (N, Cout, H, W), out.shape
    assert bool(jnp.all(jnp.isfinite(out)))
    assert bool(jnp.all(out >= 0.0))                  # ReLU output non-negative

    # Tolerance-checked reference (bf16 matmul operands, f32 accumulation):
    # post-BN values are O(1), so a 0.15 max-abs bound is a loose but
    # meaningful ~few-percent check.
    x_nhwc = jnp.transpose(x, (0, 2, 3, 1))
    ref = jnp.transpose(_reference_double_conv(x_nhwc, params), (0, 3, 1, 2))
    max_err = float(jnp.max(jnp.abs(out - ref)))
    assert max_err < 0.15, f"max abs error vs f32 reference: {max_err}"

    print("KERNEL_OK")
</pallas_src>

<mosaic_0001>
module attributes {stable_mosaic.version = 11 : i64} {
  func.func @double_conv_kernel(%arg0: memref<32x64xbf16, #tpu.memory_space<vmem>>, %arg1: memref<3x64x128xbf16, #tpu.memory_space<vmem>>, %arg2: memref<3x128x128xbf16, #tpu.memory_space<vmem>>, %arg3: memref<1x8xf32, #tpu.memory_space<vmem>>, %arg4: memref<1x8xf32, #tpu.memory_space<vmem>>, %arg5: memref<1x8xf32, #tpu.memory_space<vmem>>, %arg6: memref<1x8xf32, #tpu.memory_space<vmem>>, %arg7: memref<32x128xf32, #tpu.memory_space<vmem>>) attributes {dimension_semantics = [], scalar_prefetch = 0 : i64, scratch_operands = 0 : i64, tpu.core_type = #tpu.core_type<tc>} {
    %c0 = arith.constant 0 : index
    %c0_0 = arith.constant 0 : index
    %0 = vector.load %arg0[%c0, %c0_0] : memref<32x64xbf16, #tpu.memory_space<vmem>>, vector<32x64xbf16>
    %1 = arith.extf %0 : vector<32x64xbf16> to vector<32x64xf32>
    %2 = tpu.iota {dimensions = array<i32: 0>} : vector<32x1xi32>
    %c16_i32 = arith.constant 16 : i32
    %c0_i32 = arith.constant 0 : i32
    %3 = arith.cmpi eq, %c16_i32, %c0_i32 : i32
    %c1_i32 = arith.constant 1 : i32
    %4 = arith.select %3, %c1_i32, %c16_i32 : i32
    %5 = vector.broadcast %4 : i32 to vector<32x1xi32>
    %6 = arith.remsi %2, %5 : vector<32x1xi32>
    %c0_i32_1 = arith.constant 0 : i32
    %7 = vector.broadcast %c0_i32_1 : i32 to vector<32x1xi32>
    %8 = arith.cmpi ne, %6, %7 : vector<32x1xi32>
    %c0_i32_2 = arith.constant 0 : i32
    %9 = vector.broadcast %c0_i32_2 : i32 to vector<32x1xi32>
    %10 = arith.cmpi slt, %6, %9 : vector<32x1xi32>
    %c0_i32_3 = arith.constant 0 : i32
    %11 = arith.cmpi slt, %4, %c0_i32_3 : i32
    %12 = vector.broadcast %11 : i1 to vector<32x1xi1>
    %13 = vector.broadcast %12 : vector<32x1xi1> to vector<32x1xi1>
    %14 = arith.xori %10, %13 : vector<32x1xi1>
    %15 = arith.andi %14, %8 : vector<32x1xi1>
    %16 = vector.broadcast %4 : i32 to vector<32x1xi32>
    %17 = arith.addi %6, %16 : vector<32x1xi32>
    %18 = arith.select %15, %17, %6 : vector<32x1xi1>, vector<32x1xi32>
    %c0_i32_4 = arith.constant 0 : i32
    %19 = vector.broadcast %c0_i32_4 : i32 to vector<32x1xi32>
    %20 = arith.cmpi sgt, %18, %19 : vector<32x1xi32>
    %c1_i32_5 = arith.constant 1 : i32
    %21 = tpu.dynamic_rotate %1 by %c1_i32_5 dim 0 : vector<32x64xf32>, i32 -> vector<32x64xf32>
    %cst = arith.constant 0.000000e+00 : f32
    %22 = vector.shape_cast %20 : vector<32x1xi1> to vector<32x1xi1>
    %23 = vector.broadcast %22 : vector<32x1xi1> to vector<32x64xi1>
    %24 = vector.broadcast %cst : f32 to vector<32x64xf32>
    %25 = arith.select %23, %21, %24 : vector<32x64xi1>, vector<32x64xf32>
    %c15_i32 = arith.constant 15 : i32
    %26 = vector.broadcast %c15_i32 : i32 to vector<32x1xi32>
    %27 = arith.cmpi slt, %18, %26 : vector<32x1xi32>
    %c31_i32 = arith.constant 31 : i32
    %28 = tpu.dynamic_rotate %1 by %c31_i32 dim 0 : vector<32x64xf32>, i32 -> vector<32x64xf32>
    %cst_6 = arith.constant 0.000000e+00 : f32
    %29 = vector.shape_cast %27 : vector<32x1xi1> to vector<32x1xi1>
    %30 = vector.broadcast %29 : vector<32x1xi1> to vector<32x64xi1>
    %31 = vector.broadcast %cst_6 : f32 to vector<32x64xf32>
    %32 = arith.select %30, %28, %31 : vector<32x64xi1>, vector<32x64xf32>
    %33 = arith.truncf %25 : vector<32x64xf32> to vector<32x64xbf16>
    %c0_7 = arith.constant 0 : index
    %c0_8 = arith.constant 0 : index
    %c0_9 = arith.constant 0 : index
    %34 = vector.load %arg1[%c0_7, %c0_8, %c0_9] : memref<3x64x128xbf16, #tpu.memory_space<vmem>>, vector<1x64x128xbf16>
    %35 = vector.shape_cast %34 : vector<1x64x128xbf16> to vector<64x128xbf16>
    %cst_10 = arith.constant dense<0.000000e+00> : vector<32x128xf32>
    %36 = tpu.matmul %33, %35, %cst_10 {dimension_numbers = #tpu.dot_dimension_numbers<[1], [0], [0], [1], [0, 0, 1, 1], [], []>} : vector<32x64xbf16>, vector<64x128xbf16>, vector<32x128xf32> -> vector<32x128xf32>
    %37 = arith.truncf %1 : vector<32x64xf32> to vector<32x64xbf16>
    %c1 = arith.constant 1 : index
    %c0_11 = arith.constant 0 : index
    %c0_12 = arith.constant 0 : index
    %38 = vector.load %arg1[%c1, %c0_11, %c0_12] : memref<3x64x128xbf16, #tpu.memory_space<vmem>>, vector<1x64x128xbf16>
    %39 = vector.shape_cast %38 : vector<1x64x128xbf16> to vector<64x128xbf16>
    %cst_13 = arith.constant dense<0.000000e+00> : vector<32x128xf32>
    %40 = tpu.matmul %37, %39, %cst_13 {dimension_numbers = #tpu.dot_dimension_numbers<[1], [0], [0], [1], [0, 0, 1, 1], [], []>} : vector<32x64xbf16>, vector<64x128xbf16>, vector<32x128xf32> -> vector<32x128xf32>
    %41 = arith.addf %36, %40 : vector<32x128xf32>
    %42 = arith.truncf %32 : vector<32x64xf32> to vector<32x64xbf16>
    %c2 = arith.constant 2 : index
    %c0_14 = arith.constant 0 : index
    %c0_15 = arith.constant 0 : index
    %43 = vector.load %arg1[%c2, %c0_14, %c0_15] : memref<3x64x128xbf16, #tpu.memory_space<vmem>>, vector<1x64x128xbf16>
    %44 = vector.shape_cast %43 : vector<1x64x128xbf16> to vector<64x128xbf16>
    %cst_16 = arith.constant dense<0.000000e+00> : vector<32x128xf32>
    %45 = tpu.matmul %42, %44, %cst_16 {dimension_numbers = #tpu.dot_dimension_numbers<[1], [0], [0], [1], [0, 0, 1, 1], [], []>} : vector<32x64xbf16>, vector<64x128xbf16>, vector<32x128xf32> -> vector<32x128xf32>
    %46 = arith.addf %41, %45 : vector<32x128xf32>
    %c0_17 = arith.constant 0 : index
    %c0_18 = arith.constant 0 : index
    %47 = vector.load %arg3[%c0_17, %c0_18] : memref<1x8xf32, #tpu.memory_space<vmem>>, vector<1x8xf32>
    %c0_19 = arith.constant 0 : index
    %c0_20 = arith.constant 0 : index
    %48 = vector.load %arg4[%c0_19, %c0_20] : memref<1x8xf32, #tpu.memory_space<vmem>>, vector<1x8xf32>
    %cst_21 = arith.constant dense<0.000000e+00> : vector<128xf32>
    %49 = vector.multi_reduction <add>, %46, %cst_21 [0] : vector<32x128xf32> to vector<128xf32>
    %50 = vector.shape_cast %49 : vector<128xf32> to vector<1x128xf32>
    %51 = arith.mulf %46, %46 : vector<32x128xf32>
    %cst_22 = arith.constant dense<0.000000e+00> : vector<128xf32>
    %52 = vector.multi_reduction <add>, %51, %cst_22 [0] : vector<32x128xf32> to vector<128xf32>
    %53 = vector.shape_cast %52 : vector<128xf32> to vector<1x128xf32>
    %54 = vector.extract_strided_slice %50 {offsets = [0, 0], sizes = [1, 8], strides = [1, 1]} : vector<1x128xf32> to vector<1x8xf32>
    %55 = vector.extract_strided_slice %53 {offsets = [0, 0], sizes = [1, 8], strides = [1, 1]} : vector<1x128xf32> to vector<1x8xf32>
    %56 = vector.extract_strided_slice %50 {offsets = [0, 8], sizes = [1, 8], strides = [1, 1]} : vector<1x128xf32> to vector<1x8xf32>
    %57 = arith.addf %54, %56 : vector<1x8xf32>
    %58 = vector.extract_strided_slice %53 {offsets = [0, 8], sizes = [1, 8], strides = [1, 1]} : vector<1x128xf32> to vector<1x8xf32>
    %59 = arith.addf %55, %58 : vector<1x8xf32>
    %60 = vector.extract_strided_slice %50 {offsets = [0, 16], sizes = [1, 8], strides = [1, 1]} : vector<1x128xf32> to vector<1x8xf32>
    %61 = arith.addf %57, %60 : vector<1x8xf32>
    %62 = vector.extract_strided_slice %53 {offsets = [0, 16], sizes = [1, 8], strides = [1, 1]} : vector<1x128xf32> to vector<1x8xf32>
    %63 = arith.addf %59, %62 : vector<1x8xf32>
    %64 = vector.extract_strided_slice %50 {offsets = [0, 24], sizes = [1, 8], strides = [1, 1]} : vector<1x128xf32> to vector<1x8xf32>
    %65 = arith.addf %61, %64 : vector<1x8xf32>
    %66 = vector.extract_strided_slice %53 {offsets = [0, 24], sizes = [1, 8], strides = [1, 1]} : vector<1x128xf32> to vector<1x8xf32>
    %67 = arith.addf %63, %66 : vector<1x8xf32>
    %68 = vector.extract_strided_slice %50 {offsets = [0, 32], sizes = [1, 8], strides = [1, 1]} : vector<1x128xf32> to vector<1x8xf32>
    %69 = arith.addf %65, %68 : vector<1x8xf32>
    %70 = vector.extract_strided_slice %53 {offsets = [0, 32], sizes = [1, 8], strides = [1, 1]} : vector<1x128xf32> to vector<1x8xf32>
    %71 = arith.addf %67, %70 : vector<1x8xf32>
    %72 = vector.extract_strided_slice %50 {offsets = [0, 40], sizes = [1, 8], strides = [1, 1]} : vector<1x128xf32> to vector<1x8xf32>
    %73 = arith.addf %69, %72 : vector<1x8xf32>
    %74 = vector.extract_strided_slice %53 {offsets = [0, 40], sizes = [1, 8], strides = [1, 1]} : vector<1x128xf32> to vector<1x8xf32>
    %75 = arith.addf %71, %74 : vector<1x8xf32>
    %76 = vector.extract_strided_slice %50 {offsets = [0, 48], sizes = [1, 8], strides = [1, 1]} : vector<1x128xf32> to vector<1x8xf32>
    %77 = arith.addf %73, %76 : vector<1x8xf32>
    %78 = vector.extract_strided_slice %53 {offsets = [0, 48], sizes = [1, 8], strides = [1, 1]} : vector<1x128xf32> to vector<1x8xf32>
    %79 = arith.addf %75, %78 : vector<1x8xf32>
    %80 = vector.extract_strided_slice %50 {offsets = [0, 56], sizes = [1, 8], strides = [1, 1]} : vector<1x128xf32> to vector<1x8xf32>
    %81 = arith.addf %77, %80 : vector<1x8xf32>
    %82 = vector.extract_strided_slice %53 {offsets = [0, 56], sizes = [1, 8], strides = [1, 1]} : vector<1x128xf32> to vector<1x8xf32>
    %83 = arith.addf %79, %82 : vector<1x8xf32>
    %84 = vector.extract_strided_slice %50 {offsets = [0, 64], sizes = [1, 8], strides = [1, 1]} : vector<1x128xf32> to vector<1x8xf32>
    %85 = arith.addf %81, %84 : vector<1x8xf32>
    %86 = vector.extract_strided_slice %53 {offsets = [0, 64], sizes = [1, 8], strides = [1, 1]} : vector<1x128xf32> to vector<1x8xf32>
    %87 = arith.addf %83, %86 : vector<1x8xf32>
    %88 = vector.extract_strided_slice %50 {offsets = [0, 72], sizes = [1, 8], strides = [1, 1]} : vector<1x128xf32> to vector<1x8xf32>
    %89 = arith.addf %85, %88 : vector<1x8xf32>
    %90 = vector.extract_strided_slice %53 {offsets = [0, 72], sizes = [1, 8], strides = [1, 1]} : vector<1x128xf32> to vector<1x8xf32>
    %91 = arith.addf %87, %90 : vector<1x8xf32>
    %92 = vector.extract_strided_slice %50 {offsets = [0, 80], sizes = [1, 8], strides = [1, 1]} : vector<1x128xf32> to vector<1x8xf32>
    %93 = arith.addf %89, %92 : vector<1x8xf32>
    %94 = vector.extract_strided_slice %53 {offsets = [0, 80], sizes = [1, 8], strides = [1, 1]} : vector<1x128xf32> to vector<1x8xf32>
    %95 = arith.addf %91, %94 : vector<1x8xf32>
    %96 = vector.extract_strided_slice %50 {offsets = [0, 88], sizes = [1, 8], strides = [1, 1]} : vector<1x128xf32> to vector<1x8xf32>
    %97 = arith.addf %93, %96 : vector<1x8xf32>
    %98 = vector.extract_strided_slice %53 {offsets = [0, 88], sizes = [1, 8], strides = [1, 1]} : vector<1x128xf32> to vector<1x8xf32>
    %99 = arith.addf %95, %98 : vector<1x8xf32>
    %100 = vector.extract_strided_slice %50 {offsets = [0, 96], sizes = [1, 8], strides = [1, 1]} : vector<1x128xf32> to vector<1x8xf32>
    %101 = arith.addf %97, %100 : vector<1x8xf32>
    %102 = vector.extract_strided_slice %53 {offsets = [0, 96], sizes = [1, 8], strides = [1, 1]} : vector<1x128xf32> to vector<1x8xf32>
    %103 = arith.addf %99, %102 : vector<1x8xf32>
    %104 = vector.extract_strided_slice %50 {offsets = [0, 104], sizes = [1, 8], strides = [1, 1]} : vector<1x128xf32> to vector<1x8xf32>
    %105 = arith.addf %101, %104 : vector<1x8xf32>
    %106 = vector.extract_strided_slice %53 {offsets = [0, 104], sizes = [1, 8], strides = [1, 1]} : vector<1x128xf32> to vector<1x8xf32>
    %107 = arith.addf %103, %106 : vector<1x8xf32>
    %108 = vector.extract_strided_slice %50 {offsets = [0, 112], sizes = [1, 8], strides = [1, 1]} : vector<1x128xf32> to vector<1x8xf32>
    %109 = arith.addf %105, %108 : vector<1x8xf32>
    %110 = vector.extract_strided_slice %53 {offsets = [0, 112], sizes = [1, 8], strides = [1, 1]} : vector<1x128xf32> to vector<1x8xf32>
    %111 = arith.addf %107, %110 : vector<1x8xf32>
    %112 = vector.extract_strided_slice %50 {offsets = [0, 120], sizes = [1, 8], strides = [1, 1]} : vector<1x128xf32> to vector<1x8xf32>
    %113 = arith.addf %109, %112 : vector<1x8xf32>
    %114 = vector.extract_strided_slice %53 {offsets = [0, 120], sizes = [1, 8], strides = [1, 1]} : vector<1x128xf32> to vector<1x8xf32>
    %115 = arith.addf %111, %114 : vector<1x8xf32>
    %cst_23 = arith.constant 5.120000e+02 : f32
    %116 = vector.broadcast %cst_23 : f32 to vector<1x8xf32>
    %117 = arith.divf %113, %116 : vector<1x8xf32>
    %cst_24 = arith.constant 5.120000e+02 : f32
    %118 = vector.broadcast %cst_24 : f32 to vector<1x8xf32>
    %119 = arith.divf %115, %118 : vector<1x8xf32>
    %120 = arith.mulf %117, %117 : vector<1x8xf32>
    %121 = arith.subf %119, %120 : vector<1x8xf32>
    %cst_25 = arith.constant 9.99999974E-6 : f32
    %122 = vector.broadcast %cst_25 : f32 to vector<1x8xf32>
    %123 = arith.addf %121, %122 : vector<1x8xf32>
    %124 = math.rsqrt %123 : vector<1x8xf32>
    %125 = arith.mulf %47, %124 : vector<1x8xf32>
    %126 = arith.mulf %117, %125 : vector<1x8xf32>
    %127 = arith.subf %48, %126 : vector<1x8xf32>
    %128 = tpu.concatenate %125, %125, %125, %125, %125, %125, %125, %125, %125, %125, %125, %125, %125, %125, %125, %125 in 1 : vector<1x8xf32>, vector<1x8xf32>, vector<1x8xf32>, vector<1x8xf32>, vector<1x8xf32>, vector<1x8xf32>, vector<1x8xf32>, vector<1x8xf32>, vector<1x8xf32>, vector<1x8xf32>, vector<1x8xf32>, vector<1x8xf32>, vector<1x8xf32>, vector<1x8xf32>, vector<1x8xf32>, vector<1x8xf32> -> vector<1x128xf32>
    %129 = tpu.concatenate %127, %127, %127, %127, %127, %127, %127, %127, %127, %127, %127, %127, %127, %127, %127, %127 in 1 : vector<1x8xf32>, vector<1x8xf32>, vector<1x8xf32>, vector<1x8xf32>, vector<1x8xf32>, vector<1x8xf32>, vector<1x8xf32>, vector<1x8xf32>, vector<1x8xf32>, vector<1x8xf32>, vector<1x8xf32>, vector<1x8xf32>, vector<1x8xf32>, vector<1x8xf32>, vector<1x8xf32>, vector<1x8xf32> -> vector<1x128xf32>
    %130 = vector.broadcast %128 : vector<1x128xf32> to vector<32x128xf32>
    %131 = arith.mulf %46, %130 : vector<32x128xf32>
    %132 = vector.broadcast %129 : vector<1x128xf32> to vector<32x128xf32>
    %133 = arith.addf %131, %132 : vector<32x128xf32>
    %cst_26 = arith.constant 0.000000e+00 : f32
    %134 = vector.broadcast %cst_26 : f32 to vector<32x128xf32>
    %135 = arith.maximumf %133, %134 : vector<32x128xf32>
    %136 = tpu.iota {dimensions = array<i32: 0>} : vector<32x1xi32>
    %c16_i32_27 = arith.constant 16 : i32
    %c0_i32_28 = arith.constant 0 : i32
    %137 = arith.cmpi eq, %c16_i32_27, %c0_i32_28 : i32
    %c1_i32_29 = arith.constant 1 : i32
    %138 = arith.select %137, %c1_i32_29, %c16_i32_27 : i32
    %139 = vector.broadcast %138 : i32 to vector<32x1xi32>
    %140 = arith.remsi %136, %139 : vector<32x1xi32>
    %c0_i32_30 = arith.constant 0 : i32
    %141 = vector.broadcast %c0_i32_30 : i32 to vector<32x1xi32>
    %142 = arith.cmpi ne, %140, %141 : vector<32x1xi32>
    %c0_i32_31 = arith.constant 0 : i32
    %143 = vector.broadcast %c0_i32_31 : i32 to vector<32x1xi32>
    %144 = arith.cmpi slt, %140, %143 : vector<32x1xi32>
    %c0_i32_32 = arith.constant 0 : i32
    %145 = arith.cmpi slt, %138, %c0_i32_32 : i32
    %146 = vector.broadcast %145 : i1 to vector<32x1xi1>
    %147 = vector.broadcast %146 : vector<32x1xi1> to vector<32x1xi1>
    %148 = arith.xori %144, %147 : vector<32x1xi1>
    %149 = arith.andi %148, %142 : vector<32x1xi1>
    %150 = vector.broadcast %138 : i32 to vector<32x1xi32>
    %151 = arith.addi %140, %150 : vector<32x1xi32>
    %152 = arith.select %149, %151, %140 : vector<32x1xi1>, vector<32x1xi32>
    %c0_i32_33 = arith.constant 0 : i32
    %153 = vector.broadcast %c0_i32_33 : i32 to vector<32x1xi32>
    %154 = arith.cmpi sgt, %152, %153 : vector<32x1xi32>
    %c1_i32_34 = arith.constant 1 : i32
    %155 = tpu.dynamic_rotate %135 by %c1_i32_34 dim 0 : vector<32x128xf32>, i32 -> vector<32x128xf32>
    %cst_35 = arith.constant 0.000000e+00 : f32
    %156 = vector.shape_cast %154 : vector<32x1xi1> to vector<32x1xi1>
    %157 = vector.broadcast %156 : vector<32x1xi1> to vector<32x128xi1>
    %158 = vector.broadcast %cst_35 : f32 to vector<32x128xf32>
    %159 = arith.select %157, %155, %158 : vector<32x128xi1>, vector<32x128xf32>
    %c15_i32_36 = arith.constant 15 : i32
    %160 = vector.broadcast %c15_i32_36 : i32 to vector<32x1xi32>
    %161 = arith.cmpi slt, %152, %160 : vector<32x1xi32>
    %c31_i32_37 = arith.constant 31 : i32
    %162 = tpu.dynamic_rotate %135 by %c31_i32_37 dim 0 : vector<32x128xf32>, i32 -> vector<32x128xf32>
    %cst_38 = arith.constant 0.000000e+00 : f32
    %163 = vector.shape_cast %161 : vector<32x1xi1> to vector<32x1xi1>
    %164 = vector.broadcast %163 : vector<32x1xi1> to vector<32x128xi1>
    %165 = vector.broadcast %cst_38 : f32 to vector<32x128xf32>
    %166 = arith.select %164, %162, %165 : vector<32x128xi1>, vector<32x128xf32>
    %167 = arith.truncf %159 : vector<32x128xf32> to vector<32x128xbf16>
    %c0_39 = arith.constant 0 : index
    %c0_40 = arith.constant 0 : index
    %c0_41 = arith.constant 0 : index
    %168 = vector.load %arg2[%c0_39, %c0_40, %c0_41] : memref<3x128x128xbf16, #tpu.memory_space<vmem>>, vector<1x128x128xbf16>
    %169 = vector.shape_cast %168 : vector<1x128x128xbf16> to vector<128x128xbf16>
    %cst_42 = arith.constant dense<0.000000e+00> : vector<32x128xf32>
    %170 = tpu.matmul %167, %169, %cst_42 {dimension_numbers = #tpu.dot_dimension_numbers<[1], [0], [0], [1], [0, 0, 1, 1], [], []>} : vector<32x128xbf16>, vector<128x128xbf16>, vector<32x128xf32> -> vector<32x128xf32>
    %171 = arith.truncf %135 : vector<32x128xf32> to vector<32x128xbf16>
    %c1_43 = arith.constant 1 : index
    %c0_44 = arith.constant 0 : index
    %c0_45 = arith.constant 0 : index
    %172 = vector.load %arg2[%c1_43, %c0_44, %c0_45] : memref<3x128x128xbf16, #tpu.memory_space<vmem>>, vector<1x128x128xbf16>
    %173 = vector.shape_cast %172 : vector<1x128x128xbf16> to vector<128x128xbf16>
    %cst_46 = arith.constant dense<0.000000e+00> : vector<32x128xf32>
    %174 = tpu.matmul %171, %173, %cst_46 {dimension_numbers = #tpu.dot_dimension_numbers<[1], [0], [0], [1], [0, 0, 1, 1], [], []>} : vector<32x128xbf16>, vector<128x128xbf16>, vector<32x128xf32> -> vector<32x128xf32>
    %175 = arith.addf %170, %174 : vector<32x128xf32>
    %176 = arith.truncf %166 : vector<32x128xf32> to vector<32x128xbf16>
    %c2_47 = arith.constant 2 : index
    %c0_48 = arith.constant 0 : index
    %c0_49 = arith.constant 0 : index
    %177 = vector.load %arg2[%c2_47, %c0_48, %c0_49] : memref<3x128x128xbf16, #tpu.memory_space<vmem>>, vector<1x128x128xbf16>
    %178 = vector.shape_cast %177 : vector<1x128x128xbf16> to vector<128x128xbf16>
    %cst_50 = arith.constant dense<0.000000e+00> : vector<32x128xf32>
    %179 = tpu.matmul %176, %178, %cst_50 {dimension_numbers = #tpu.dot_dimension_numbers<[1], [0], [0], [1], [0, 0, 1, 1], [], []>} : vector<32x128xbf16>, vector<128x128xbf16>, vector<32x128xf32> -> vector<32x128xf32>
    %180 = arith.addf %175, %179 : vector<32x128xf32>
    %c0_51 = arith.constant 0 : index
    %c0_52 = arith.constant 0 : index
    %181 = vector.load %arg5[%c0_51, %c0_52] : memref<1x8xf32, #tpu.memory_space<vmem>>, vector<1x8xf32>
    %c0_53 = arith.constant 0 : index
    %c0_54 = arith.constant 0 : index
    %182 = vector.load %arg6[%c0_53, %c0_54] : memref<1x8xf32, #tpu.memory_space<vmem>>, vector<1x8xf32>
    %cst_55 = arith.constant dense<0.000000e+00> : vector<128xf32>
    %183 = vector.multi_reduction <add>, %180, %cst_55 [0] : vector<32x128xf32> to vector<128xf32>
    %184 = vector.shape_cast %183 : vector<128xf32> to vector<1x128xf32>
    %185 = arith.mulf %180, %180 : vector<32x128xf32>
    %cst_56 = arith.constant dense<0.000000e+00> : vector<128xf32>
    %186 = vector.multi_reduction <add>, %185, %cst_56 [0] : vector<32x128xf32> to vector<128xf32>
    %187 = vector.shape_cast %186 : vector<128xf32> to vector<1x128xf32>
    %188 = vector.extract_strided_slice %184 {offsets = [0, 0], sizes = [1, 8], strides = [1, 1]} : vector<1x128xf32> to vector<1x8xf32>
    %189 = vector.extract_strided_slice %187 {offsets = [0, 0], sizes = [1, 8], strides = [1, 1]} : vector<1x128xf32> to vector<1x8xf32>
    %190 = vector.extract_strided_slice %184 {offsets = [0, 8], sizes = [1, 8], strides = [1, 1]} : vector<1x128xf32> to vector<1x8xf32>
    %191 = arith.addf %188, %190 : vector<1x8xf32>
    %192 = vector.extract_strided_slice %187 {offsets = [0, 8], sizes = [1, 8], strides = [1, 1]} : vector<1x128xf32> to vector<1x8xf32>
    %193 = arith.addf %189, %192 : vector<1x8xf32>
    %194 = vector.extract_strided_slice %184 {offsets = [0, 16], sizes = [1, 8], strides = [1, 1]} : vector<1x128xf32> to vector<1x8xf32>
    %195 = arith.addf %191, %194 : vector<1x8xf32>
    %196 = vector.extract_strided_slice %187 {offsets = [0, 16], sizes = [1, 8], strides = [1, 1]} : vector<1x128xf32> to vector<1x8xf32>
    %197 = arith.addf %193, %196 : vector<1x8xf32>
    %198 = vector.extract_strided_slice %184 {offsets = [0, 24], sizes = [1, 8], strides = [1, 1]} : vector<1x128xf32> to vector<1x8xf32>
    %199 = arith.addf %195, %198 : vector<1x8xf32>
    %200 = vector.extract_strided_slice %187 {offsets = [0, 24], sizes = [1, 8], strides = [1, 1]} : vector<1x128xf32> to vector<1x8xf32>
    %201 = arith.addf %197, %200 : vector<1x8xf32>
    %202 = vector.extract_strided_slice %184 {offsets = [0, 32], sizes = [1, 8], strides = [1, 1]} : vector<1x128xf32> to vector<1x8xf32>
    %203 = arith.addf %199, %202 : vector<1x8xf32>
    %204 = vector.extract_strided_slice %187 {offsets = [0, 32], sizes = [1, 8], strides = [1, 1]} : vector<1x128xf32> to vector<1x8xf32>
    %205 = arith.addf %201, %204 : vector<1x8xf32>
    %206 = vector.extract_strided_slice %184 {offsets = [0, 40], sizes = [1, 8], strides = [1, 1]} : vector<1x128xf32> to vector<1x8xf32>
    %207 = arith.addf %203, %206 : vector<1x8xf32>
    %208 = vector.extract_strided_slice %187 {offsets = [0, 40], sizes = [1, 8], strides = [1, 1]} : vector<1x128xf32> to vector<1x8xf32>
    %209 = arith.addf %205, %208 : vector<1x8xf32>
    %210 = vector.extract_strided_slice %184 {offsets = [0, 48], sizes = [1, 8], strides = [1, 1]} : vector<1x128xf32> to vector<1x8xf32>
    %211 = arith.addf %207, %210 : vector<1x8xf32>
    %212 = vector.extract_strided_slice %187 {offsets = [0, 48], sizes = [1, 8], strides = [1, 1]} : vector<1x128xf32> to vector<1x8xf32>
    %213 = arith.addf %209, %212 : vector<1x8xf32>
    %214 = vector.extract_strided_slice %184 {offsets = [0, 56], sizes = [1, 8], strides = [1, 1]} : vector<1x128xf32> to vector<1x8xf32>
    %215 = arith.addf %211, %214 : vector<1x8xf32>
    %216 = vector.extract_strided_slice %187 {offsets = [0, 56], sizes = [1, 8], strides = [1, 1]} : vector<1x128xf32> to vector<1x8xf32>
    %217 = arith.addf %213, %216 : vector<1x8xf32>
    %218 = vector.extract_strided_slice %184 {offsets = [0, 64], sizes = [1, 8], strides = [1, 1]} : vector<1x128xf32> to vector<1x8xf32>
    %219 = arith.addf %215, %218 : vector<1x8xf32>
    %220 = vector.extract_strided_slice %187 {offsets = [0, 64], sizes = [1, 8], strides = [1, 1]} : vector<1x128xf32> to vector<1x8xf32>
    %221 = arith.addf %217, %220 : vector<1x8xf32>
    %222 = vector.extract_strided_slice %184 {offsets = [0, 72], sizes = [1, 8], strides = [1, 1]} : vector<1x128xf32> to vector<1x8xf32>
    %223 = arith.addf %219, %222 : vector<1x8xf32>
    %224 = vector.extract_strided_slice %187 {offsets = [0, 72], sizes = [1, 8], strides = [1, 1]} : vector<1x128xf32> to vector<1x8xf32>
    %225 = arith.addf %221, %224 : vector<1x8xf32>
    %226 = vector.extract_strided_slice %184 {offsets = [0, 80], sizes = [1, 8], strides = [1, 1]} : vector<1x128xf32> to vector<1x8xf32>
    %227 = arith.addf %223, %226 : vector<1x8xf32>
    %228 = vector.extract_strided_slice %187 {offsets = [0, 80], sizes = [1, 8], strides = [1, 1]} : vector<1x128xf32> to vector<1x8xf32>
    %229 = arith.addf %225, %228 : vector<1x8xf32>
    %230 = vector.extract_strided_slice %184 {offsets = [0, 88], sizes = [1, 8], strides = [1, 1]} : vector<1x128xf32> to vector<1x8xf32>
    %231 = arith.addf %227, %230 : vector<1x8xf32>
    %232 = vector.extract_strided_slice %187 {offsets = [0, 88], sizes = [1, 8], strides = [1, 1]} : vector<1x128xf32> to vector<1x8xf32>
    %233 = arith.addf %229, %232 : vector<1x8xf32>
    %234 = vector.extract_strided_slice %184 {offsets = [0, 96], sizes = [1, 8], strides = [1, 1]} : vector<1x128xf32> to vector<1x8xf32>
    %235 = arith.addf %231, %234 : vector<1x8xf32>
    %236 = vector.extract_strided_slice %187 {offsets = [0, 96], sizes = [1, 8], strides = [1, 1]} : vector<1x128xf32> to vector<1x8xf32>
    %237 = arith.addf %233, %236 : vector<1x8xf32>
    %238 = vector.extract_strided_slice %184 {offsets = [0, 104], sizes = [1, 8], strides = [1, 1]} : vector<1x128xf32> to vector<1x8xf32>
    %239 = arith.addf %235, %238 : vector<1x8xf32>
    %240 = vector.extract_strided_slice %187 {offsets = [0, 104], sizes = [1, 8], strides = [1, 1]} : vector<1x128xf32> to vector<1x8xf32>
    %241 = arith.addf %237, %240 : vector<1x8xf32>
    %242 = vector.extract_strided_slice %184 {offsets = [0, 112], sizes = [1, 8], strides = [1, 1]} : vector<1x128xf32> to vector<1x8xf32>
    %243 = arith.addf %239, %242 : vector<1x8xf32>
    %244 = vector.extract_strided_slice %187 {offsets = [0, 112], sizes = [1, 8], strides = [1, 1]} : vector<1x128xf32> to vector<1x8xf32>
    %245 = arith.addf %241, %244 : vector<1x8xf32>
    %246 = vector.extract_strided_slice %184 {offsets = [0, 120], sizes = [1, 8], strides = [1, 1]} : vector<1x128xf32> to vector<1x8xf32>
    %247 = arith.addf %243, %246 : vector<1x8xf32>
    %248 = vector.extract_strided_slice %187 {offsets = [0, 120], sizes = [1, 8], strides = [1, 1]} : vector<1x128xf32> to vector<1x8xf32>
    %249 = arith.addf %245, %248 : vector<1x8xf32>
    %cst_57 = arith.constant 5.120000e+02 : f32
    %250 = vector.broadcast %cst_57 : f32 to vector<1x8xf32>
    %251 = arith.divf %247, %250 : vector<1x8xf32>
    %cst_58 = arith.constant 5.120000e+02 : f32
    %252 = vector.broadcast %cst_58 : f32 to vector<1x8xf32>
    %253 = arith.divf %249, %252 : vector<1x8xf32>
    %254 = arith.mulf %251, %251 : vector<1x8xf32>
    %255 = arith.subf %253, %254 : vector<1x8xf32>
    %cst_59 = arith.constant 9.99999974E-6 : f32
    %256 = vector.broadcast %cst_59 : f32 to vector<1x8xf32>
    %257 = arith.addf %255, %256 : vector<1x8xf32>
    %258 = math.rsqrt %257 : vector<1x8xf32>
    %259 = arith.mulf %181, %258 : vector<1x8xf32>
    %260 = arith.mulf %251, %259 : vector<1x8xf32>
    %261 = arith.subf %182, %260 : vector<1x8xf32>
    %262 = tpu.concatenate %259, %259, %259, %259, %259, %259, %259, %259, %259, %259, %259, %259, %259, %259, %259, %259 in 1 : vector<1x8xf32>, vector<1x8xf32>, vector<1x8xf32>, vector<1x8xf32>, vector<1x8xf32>, vector<1x8xf32>, vector<1x8xf32>, vector<1x8xf32>, vector<1x8xf32>, vector<1x8xf32>, vector<1x8xf32>, vector<1x8xf32>, vector<1x8xf32>, vector<1x8xf32>, vector<1x8xf32>, vector<1x8xf32> -> vector<1x128xf32>
    %263 = tpu.concatenate %261, %261, %261, %261, %261, %261, %261, %261, %261, %261, %261, %261, %261, %261, %261, %261 in 1 : vector<1x8xf32>, vector<1x8xf32>, vector<1x8xf32>, vector<1x8xf32>, vector<1x8xf32>, vector<1x8xf32>, vector<1x8xf32>, vector<1x8xf32>, vector<1x8xf32>, vector<1x8xf32>, vector<1x8xf32>, vector<1x8xf32>, vector<1x8xf32>, vector<1x8xf32>, vector<1x8xf32>, vector<1x8xf32> -> vector<1x128xf32>
    %264 = vector.broadcast %262 : vector<1x128xf32> to vector<32x128xf32>
    %265 = arith.mulf %180, %264 : vector<32x128xf32>
    %266 = vector.broadcast %263 : vector<1x128xf32> to vector<32x128xf32>
    %267 = arith.addf %265, %266 : vector<32x128xf32>
    %cst_60 = arith.constant 0.000000e+00 : f32
    %268 = vector.broadcast %cst_60 : f32 to vector<32x128xf32>
    %269 = arith.maximumf %267, %268 : vector<32x128xf32>
    %c0_61 = arith.constant 0 : index
    %c0_62 = arith.constant 0 : index
    %270 = vector.load %arg7[%c0_61, %c0_62] : memref<32x128xf32, #tpu.memory_space<vmem>>, vector<32x128xf32>
    tpu.vector_store %arg7[%c0_61, %c0_62], %269 {strides = array<i32>} : memref<32x128xf32, #tpu.memory_space<vmem>>, vector<32x128xf32>,
    return
  }
}

</mosaic_0001>

<bundles_post_ra>
// kernel: double_conv_forward.1
= control target key start
LH: loop header
LB: loop body
LE: loop exit
PB: predicated region body
PF: predicated region fallthrough
CT: control target
= control target key end

     0   :  { %v35_v0 = vlaneseq  ;;  %vm191_vm4 = vcmask 523264   ;;  %s1536_s9 = smov 112   ;;  %s1537_s10 = smov 120   ;;  %vm2123_vm11 = vcmask 64512   ;;  %vm2121_vm12 = vcmask 130048   ;;  %s2112_s1 = inlined_call_operand.vmem [shape: bf16[3,64,128], index: 1, kind: input, shape index: {}]   ;;  %s2113_s0 = inlined_call_operand.vmem [shape: bf16[32,64], index: 0, kind: input, shape index: {}]   ;;  %s2114_s3 = inlined_call_operand.vmem [shape: f32[1,8], index: 3, kind: input, shape index: {}]   ;;  %s2115_s4 = inlined_call_operand.vmem [shape: f32[1,8], index: 4, kind: input, shape index: {}]   ;;  %s2116_s2 = inlined_call_operand.vmem [shape: bf16[3,128,128], index: 2, kind: input, shape index: {}]   ;;  %s2117_s5 = inlined_call_operand.vmem [shape: f32[1,8], index: 5, kind: input, shape index: {}]   ;;  %s2118_s6 = inlined_call_operand.vmem [shape: f32[1,8], index: 6, kind: input, shape index: {}]   ;;  %s2119_s7 = inlined_call_operand.vmem [shape: f32[32,128], index: 7, kind: output, shape index: {}]  }
   0x1   :  { %v1475_v1 = vld [vmem:[%s2112_s1 + $0x38] sm:$0xff]  ;;  %v1474_v5 = vld [vmem:[%s2112_s1 + $0x30] sm:$0xff]  ;;  %v27_v10 = vld [vmem:[%s2113_s0] sm:$0xff]   ;;  %s1538_s11 = smov 88   ;;  %s1539_s12 = smov 80   ;;  %vm2120_vm13 = vcmask 195584  }
   0x2   :  { %v1471_v2 = vld [vmem:[%s2112_s1 + $0x18] sm:$0xff]  ;;  %v1601_v4 = vshrl.u32 %v35_v0, 7  ;;  %202 = vmatpush.bf16.msra.mxu0 %v1475_v1  ;;  %v1470_v6 = vld [vmem:[%s2112_s1 + $0x10] sm:$0xff]  ;;  %v30_v11 = vld [vmem:[%s2113_s0 + $0x8] sm:$0xff]   ;;  %v31_v12 = vunpack.c.l.bf16 %v27_v10  ;;  %v32_v13 = vunpack.c.h.bf16 %v27_v10  ;;  %s1540_s13 = smov 96   ;;  %s1541_s14 = smov 64  }
   0x3   :  { %v1479_v3 = vld [vmem:[%s2112_s1 + $0x58] sm:$0xff]  ;;  %251 = vmatpush.bf16.msra.mxu1 %v1471_v2  ;;  %v1478_v7 = vld [vmem:[%s2112_s1 + $0x50] sm:$0xff]  ;;  %v34_v14 = vunpack.c.h.bf16 %v30_v11  ;;  %v1473_v15 = vld [vmem:[%s2112_s1 + $0x28] sm:$0xff]  ;;  %v33_v18 = vunpack.c.l.bf16 %v30_v11  ;;  %s1542_s15 = smov 56   ;;  %s1543_s16 = smov 72   ;;  %vm2122_vm14 = vcmask 261120  }
   0x4   :  { %311 = vmatpush.bf16.msra.mxu2 %v1479_v3  ;;  %v44_v8 = vand.u32 15, %v1601_v4  ;;  %v37_v9 = vadd.s32 8, %v1601_v4  ;;  %vm96_vm0 = vcmp.lt.s32.totalorder %v1601_v4, 1  ;;  %v1469_v16 = vld [vmem:[%s2112_s1 + $0x8] sm:$0xff]  ;;  %vm121_vm2 = vcmp.lt.s32.totalorder %v1601_v4, 7  ;;  %v1472_v29 = vld [vmem:[%s2112_s1 + $0x20] sm:$0xff] }
   0x5   :  { %v1477_v20 = vld [vmem:[%s2112_s1 + $0x48] sm:$0xff]  ;;  %v92_v21 = vrot.slane %v31_v12, 7  ;;  %v93_v22 = vrot.slane %v32_v13, 7  ;;  %v95_v23 = vrot.slane %v34_v14, 7  ;;  %v117_v24 = vrot.slane %v31_v12, 1  ;;  %v1468_v30 = vld [vmem:[%s2112_s1] sm:$0xff] }
   0x6   :  { %203 = vmatpush.bf16.msra.mxu0 %v1474_v5  ;;  %vm1627_vm1 = vcmp.gt.s32.totalorder %v44_v8, 0  ;;  %v51_v19 = vand.u32 15, %v37_v9  ;;  %v118_v26 = vrot.slane %v32_v13, 1  ;;  %v119_v27 = vrot.slane %v33_v18, 1  ;;  %v1476_v34 = vld [vmem:[%s2112_s1 + $0x40] sm:$0xff]  ;;  %v1467_v54 = vld [vmem:[%s2113_s0 + $0x8] sm:$0xff] }
   0x7   :  { %252 = vmatpush.bf16.msra.mxu1 %v1470_v6  ;;  %v100_v28 = vsel %vm96_vm0, %v95_v23, %v92_v21  ;;  %v99_v31 = vsel %vm96_vm0, %v92_v21, %v93_v22  ;;  %v1466_v37 = vld [vmem:[%s2113_s0] sm:$0xff]  ;;  %v38_v40 = vadd.s32 16, %v1601_v4  ;;  %v39_v41 = vadd.s32 24, %v1601_v4  ;;  %s1535_s0 = smov 104   ;;  %s1544_s17 = smov 40  }
   0x8   :  { %312 = vmatpush.bf16.msra.mxu2 %v1478_v7  ;;  %vm1635_vm3 = vcmp.lt.s32.totalorder %v51_v19, 15  ;;  %v109_v32 = vsel %vm1627_vm1, %v100_v28, 0.0  ;;  %v123_v33 = vsel %vm121_vm2, %v118_v26, %v119_v27  ;;  %v124_v35 = vsel %vm121_vm2, %v117_v24, %v118_v26  ;;  %s1545_s18 = smov 32   ;;  %s1546_s19 = smov 48  }
   0x9   :  { %v135_v36 = vsel %vm1635_vm3, %v123_v33, 0.0  ;;  %v138_v38 = vpack.c.bf16 %v99_v31, %v109_v32  ;;  %v58_v42 = vand.u32 15, %v38_v40  ;;  %v94_v43 = vrot.slane %v33_v18, 7  ;;  %s1547_s20 = smov 16   ;;  %s1548_s21 = smov 24  }
   0xa   :  { %204 = vmatpush.bf16.msra.mxu0 %v1473_v15  ;;  %v266_v39 = vpack.c.bf16 %v135_v36, %v124_v35  ;;  %v65_v44 = vand.u32 15, %v39_v41  ;;  %v120_v45 = vrot.slane %v34_v14, 1  ;;  %s1549_s22 = smov 8   ;;  %vm2124_vm15 = vcmask 326656  }
   0xb   :  { %253 = vmatpush.bf16.msra.mxu1 %v1469_v16  ;;  %vm1668_vm5 = vcmp.gt.s32.totalorder %v58_v42, 0  ;;  %v98_v47 = vsel %vm96_vm0, %v93_v22, %v94_v43  ;;  %v97_v50 = vsel %vm96_vm0, %v94_v43, %v95_v23 }
   0xc   :  { %313 = vmatpush.bf16.msra.mxu2 %v1477_v20  ;;  %vm1674_vm6 = vcmp.lt.s32.totalorder %v65_v44, 15  ;;  %v125_v49 = vsel %vm121_vm2, %v120_v45, %v117_v24  ;;  %v111_v51 = vsel %vm1668_vm5, %v98_v47, 0.0  ;;  %v122_v52 = vsel %vm121_vm2, %v119_v27, %v120_v45 }
   0xd   :  { %v137_v53 = vsel %vm1674_vm6, %v125_v49, 0.0  ;;  %v139_v55 = vpack.c.bf16 %v97_v50, %v111_v51 }
   0xe   :  { %205 = vmatpush.bf16.msra.mxu0 %v1472_v29  ;;  %v267_v56 = vpack.c.bf16 %v137_v53, %v122_v52 }
   0xf   :  { %254 = vmatpush.bf16.msra.mxu1 %v1468_v30 }
  0x10   :  { %314 = vmatpush.bf16.msra.mxu2 %v1476_v34 }
  0x11   :  { %1280 = vmatmul.msk.bf16.vlgmr.msra.gmra.mxu0 %vm191_vm4, %v1466_v37 }
  0x12   :  { %1298 = vmatmul.msk.bf16.vlgmr.msra.gmra.mxu1 %vm191_vm4, %v138_v38 }
  0x13   :  { %1324 = vmatmul.msk.bf16.vlgmr.msra.gmra.mxu2 %vm191_vm4, %v266_v39 }
  0x21   :  { %1281 = vmatmul.msk.bf16.gmra.mxu0 %vm191_vm4, %v1467_v54 }
  0x22   :  { %1299 = vmatmul.msk.bf16.gmra.mxu1 %vm191_vm4, %v139_v55 }
  0x23   :  { %1325 = vmatmul.msk.bf16.gmra.mxu2 %vm191_vm4, %v267_v56 }
  0x8e   :  { %v207_v57 = vpop.f32.mrf.mxu0 }
  0x8f   :  { %v256_v58 = vpop.f32.mrf.mxu1 }
  0x90   :  { %v257_v2 = vadd.f32 %v256_v58, %v207_v57 }
  0x96   :  { %v316_v59 = vpop.f32.mrf.mxu2  ;;  %v209_v60 = vpop.f32.mrf.mxu0 }
  0x97   :  { %v258_v61 = vpop.f32.mrf.mxu1  ;;  %v1696_v9 = vadd.f32 %v316_v59, %v257_v2 }
  0x98   :  { %v259_v3 = vadd.f32 %v258_v61, %v209_v60 }
  0x99   :  { %v341_v26 = vmul.f32 %v1696_v9, %v1696_v9 }
  0x9e   :  { %v318_v62 = vpop.f32.mrf.mxu2  ;;  %v212_v63 = vpop.f32.mrf.mxu0 }
  0x9f   :  { %v261_v0 = vpop.f32.mrf.mxu1  ;;  %v1694_v6 = vadd.f32 %v318_v62, %v259_v3 }
  0xa0   :  { %v262_v5 = vadd.f32 %v261_v0, %v212_v63 }
  0xa1   :  { %v332_v11 = vadd.f32 %v1694_v6, %v1696_v9  ;;  %v342_v23 = vmul.f32 %v1694_v6, %v1694_v6 }
  0xa3   :  { %v345_v28 = vadd.f32 %v342_v23, %v341_v26 }
  0xa6   :  { %v321_v1 = vpop.f32.mrf.mxu2  ;;  %v214_v7 = vpop.f32.mrf.mxu0 }
  0xa7   :  { %v263_v8 = vpop.f32.mrf.mxu1  ;;  %v1698_v10 = vadd.f32 %v321_v1, %v262_v5 }
  0xa8   :  { %v264_v12 = vadd.f32 %v263_v8, %v214_v7  ;;  %v1550_v7 = vmov 512.0  }
  0xa9   :  { %v333_v14 = vadd.f32 %v332_v11, %v1698_v10  ;;  %v343_v27 = vmul.f32 %v1698_v10, %v1698_v10  ;;  %1529 = vrcp.f32 %v1550_v7 }
  0xab   :  { %v346_v30 = vadd.f32 %v345_v28, %v343_v27 }
  0xae   :  { %v323_v13 = vpop.f32.mrf.mxu2 }
  0xaf   :  { %v1703_v15 = vadd.f32 %v323_v13, %v264_v12 }
  0xb1   :  { %v334_v16 = vadd.f32 %v333_v14, %v1703_v15  ;;  %v344_v29 = vmul.f32 %v1703_v15, %v1703_v15 }
  0xb3   :  { %v335_v18 = vrot.slane %v334_v16, 4  ;;  %v347_v31 = vadd.f32 %v346_v30, %v344_v29 }
  0xb5   :  { %v336_v19 = vadd.f32 %v335_v18, %v334_v16  ;;  %v348_v32 = vrot.slane %v347_v31, 4  ;;  %v1530_v18 = vpop.eup %1529 }
  0xb6   :  { %v477_v23 = vmul.f32 512.0, %v1530_v18  ;;  %vm481_vm7 = vweird.f32 %v1530_v18 }
  0xb7   :  { %v337_v20 = vrot.slane %v336_v19, 2  ;;  %v349_v33 = vadd.f32 %v348_v32, %v347_v31 }
  0xb8   :  { %v478_v29 = vsub.f32 1.0, %v477_v23  ;;  %v1495_v23 = vld [vmem:[%s2116_s2 + $0x78] sm:$0xff] }
  0xb9   :  { %v338_v21 = vadd.f32 %v337_v20, %v336_v19  ;;  %v350_v34 = vrot.slane %v349_v33, 2  ;;  %762 = vmatpush.bf16.msra.mxu3 %v1495_v23 }
  0xbb   :  { %v339_v22 = vrot.slane %v338_v21, 1  ;;  %v351_v35 = vadd.f32 %v350_v34, %v349_v33  ;;  %v479_v33 = vmul.f32 %v1530_v18, %v478_v29 }
  0xbd   :  { %v1708_v24 = vadd.f32 %v339_v22, %v338_v21  ;;  %v352_v36 = vrot.slane %v351_v35, 1 }
  0xbf   :  { %372 = vrot.lane.b32.xlu2 %v1708_v24, %s1535_s0  ;;  %364 = vrot.lane.b32.xlu1 %v1708_v24, %s1536_s9  ;;  %v353_v37 = vadd.f32 %v352_v36, %v351_v35 }
  0xc0   :  { %355 = vrot.lane.b32.xlu0 %v1708_v24, %s1537_s10 }
  0xc7   :  { %388 = vrot.lane.b32.xlu2 %v1708_v24, %s1538_s11  ;;  %396 = vrot.lane.b32.xlu1 %v1708_v24, %s1539_s12 }
  0xc8   :  { %380 = vrot.lane.b32.xlu0 %v1708_v24, %s1540_s13 }
  0xcf   :  { %412 = vrot.lane.b32.xlu2 %v1708_v24, %s1541_s14  ;;  %420 = vrot.lane.b32.xlu1 %v1708_v24, %s1542_s15 }
  0xd0   :  { %404 = vrot.lane.b32.xlu0 %v1708_v24, %s1543_s16 }
  0xd7   :  { %436 = vrot.lane.b32.xlu2 %v1708_v24, %s1544_s17  ;;  %444 = vrot.lane.b32.xlu1 %v1708_v24, %s1545_s18 }
  0xd8   :  { %428 = vrot.lane.b32.xlu0 %v1708_v24, %s1546_s19 }
  0xdf   :  { %460 = vrot.lane.b32.xlu2 %v1708_v24, %s1547_s20  ;;  %368 = vrot.lane.b32.xlu1 %v353_v37, %s1536_s9 }
  0xe0   :  { %452 = vrot.lane.b32.xlu0 %v1708_v24, %s1548_s21 }
  0xe7   :  { %376 = vrot.lane.b32.xlu2 %v353_v37, %s1535_s0  ;;  %384 = vrot.lane.b32.xlu1 %v353_v37, %s1540_s13 }
  0xe8   :  { %360 = vrot.lane.b32.xlu0 %v353_v37, %s1537_s10 }
  0xef   :  { %400 = vrot.lane.b32.xlu2 %v353_v37, %s1539_s12  ;;  %408 = vrot.lane.b32.xlu1 %v353_v37, %s1543_s16 }
  0xf0   :  { %392 = vrot.lane.b32.xlu0 %v353_v37, %s1538_s11 }
  0xf7   :  { %424 = vrot.lane.b32.xlu2 %v353_v37, %s1542_s15  ;;  %432 = vrot.lane.b32.xlu1 %v353_v37, %s1546_s19 }
  0xf8   :  { %416 = vrot.lane.b32.xlu0 %v353_v37, %s1541_s14 }
  0xff   :  { %448 = vrot.lane.b32.xlu2 %v353_v37, %s1545_s18  ;;  %456 = vrot.lane.b32.xlu1 %v353_v37, %s1548_s21 }
 0x100   :  { %440 = vrot.lane.b32.xlu0 %v353_v37, %s1544_s17 }
 0x107   :  { %472 = vrot.lane.b32.xlu2 %v353_v37, %s1549_s22  ;;  %468 = vrot.lane.b32.xlu1 %v1708_v24, %s1549_s22 }
 0x108   :  { %464 = vrot.lane.b32.xlu0 %v353_v37, %s1547_s20 }
 0x119   :  { %v373_v38 = vpop.permute.xlu2 %372 }
 0x121   :  { %v389_v39 = vpop.permute.xlu2 %388 }
 0x129   :  { %v413_v42 = vpop.permute.xlu2 %412 }
 0x131   :  { %v365_v40 = vpop.permute.xlu1 %364  ;;  %v437_v45 = vpop.permute.xlu2 %436 }
 0x132   :  { %v356_v41 = vpop.permute.xlu0 %355 }
 0x133   :  { %v358_v53 = vadd.f32 %v356_v41, %v1708_v24 }
 0x135   :  { %v367_v54 = vadd.f32 %v365_v40, %v358_v53  ;;  %v480_v40 = vadd.f32 %v1530_v18, %v479_v33  ;;  %v1493_v33 = vld [vmem:[%s2116_s2 + $0x68] sm:$0xff] }
 0x137   :  { %v375_v57 = vadd.f32 %v373_v38, %v367_v54 }
 0x139   :  { %v397_v43 = vpop.permute.xlu1 %396  ;;  %v461_v51 = vpop.permute.xlu2 %460 }
 0x13a   :  { %v381_v44 = vpop.permute.xlu0 %380 }
 0x13b   :  { %v383_v59 = vadd.f32 %v381_v44, %v375_v57 }
 0x13d   :  { %v391_v61 = vadd.f32 %v389_v39, %v383_v59 }
 0x13f   :  { %v399_v1 = vadd.f32 %v397_v43, %v391_v61 }
 0x141   :  { %v421_v47 = vpop.permute.xlu1 %420  ;;  %v377_v58 = vpop.permute.xlu2 %376 }
 0x142   :  { %v405_v49 = vpop.permute.xlu0 %404 }
 0x143   :  { %v407_v5 = vadd.f32 %v405_v49, %v399_v1 }
 0x145   :  { %v415_v14 = vadd.f32 %v413_v42, %v407_v5  ;;  %v1762_v42 = vsel %vm481_vm7, %v1530_v18, %v480_v40  ;;  %v331_v5 = vld [vmem:[%s2115_s4] sm:$0x1]  ;;  %vm558_vm7 = vcmask 392192  }
 0x147   :  { %v423_v19 = vadd.f32 %v421_v47, %v415_v14 }
 0x149   :  { %v445_v50 = vpop.permute.xlu1 %444  ;;  %v401_v2 = vpop.permute.xlu2 %400 }
 0x14a   :  { %v429_v52 = vpop.permute.xlu0 %428 }
 0x14b   :  { %v431_v24 = vadd.f32 %v429_v52, %v423_v19 }
 0x14d   :  { %v439_v30 = vadd.f32 %v437_v45, %v431_v24  ;;  %v1487_v24 = vld [vmem:[%s2116_s2 + $0x38] sm:$0xff] }
 0x14e   :  { %829 = vmatpush.bf16.msrb.mxu0 %v1487_v24  ;;  %1504 = vmatpush.bf16.msrb.mxu2 %v1487_v24 }
 0x14f   :  { %v447_v34 = vadd.f32 %v445_v50, %v439_v30 }
 0x151   :  { %v369_v55 = vpop.permute.xlu1 %368  ;;  %v425_v20 = vpop.permute.xlu2 %424 }
 0x152   :  { %v453_v56 = vpop.permute.xlu0 %452 }
 0x153   :  { %v455_v38 = vadd.f32 %v453_v56, %v447_v34  ;;  %v1485_v34 = vld [vmem:[%s2116_s2 + $0x28] sm:$0xff] }
 0x155   :  { %v463_v41 = vadd.f32 %v461_v51, %v455_v38 }
 0x159   :  { %v385_v60 = vpop.permute.xlu1 %384  ;;  %v449_v35 = vpop.permute.xlu2 %448 }
 0x15a   :  { %v361_v62 = vpop.permute.xlu0 %360 }
 0x15b   :  { %v363_v63 = vadd.f32 %v361_v62, %v353_v37  ;;  %v330_v62 = vld [vmem:[%s2114_s3] sm:$0x1] }
 0x15d   :  { %v371_v0 = vadd.f32 %v369_v55, %v363_v63 }
 0x15f   :  { %v379_v3 = vadd.f32 %v377_v58, %v371_v0 }
 0x161   :  { %v409_v8 = vpop.permute.xlu1 %408  ;;  %v387_v11 = vadd.f32 %v385_v60, %v379_v3  ;;  %v473_v45 = vpop.permute.xlu2 %472 }
 0x162   :  { %v393_v12 = vpop.permute.xlu0 %392 }
 0x163   :  { %v395_v13 = vadd.f32 %v393_v12, %v387_v11 }
 0x165   :  { %v403_v16 = vadd.f32 %v401_v2, %v395_v13 }
 0x167   :  { %v411_v22 = vadd.f32 %v409_v8, %v403_v16 }
 0x169   :  { %v433_v21 = vpop.permute.xlu1 %432 }
 0x16a   :  { %v417_v26 = vpop.permute.xlu0 %416 }
 0x16b   :  { %v419_v27 = vadd.f32 %v417_v26, %v411_v22  ;;  %v1503_v26 = vld [vmem:[%s2116_s2 + $0xb8] sm:$0xff] }
 0x16c   :  { %915 = vmatpush.bf16.msrb.mxu1 %v1503_v26 }
 0x16d   :  { %v427_v28 = vadd.f32 %v425_v20, %v419_v27 }
 0x16f   :  { %v435_v32 = vadd.f32 %v433_v21, %v427_v28  ;;  %v1494_v28 = vld [vmem:[%s2116_s2 + $0x70] sm:$0xff] }
 0x170   :  { %763 = vmatpush.bf16.msra.mxu3 %v1494_v28 }
 0x171   :  { %v457_v31 = vpop.permute.xlu1 %456 }
 0x172   :  { %v441_v36 = vpop.permute.xlu0 %440 }
 0x173   :  { %v443_v37 = vadd.f32 %v441_v36, %v435_v32  ;;  %v1502_v32 = vld [vmem:[%s2116_s2 + $0xb0] sm:$0xff] }
 0x174   :  { %916 = vmatpush.bf16.msrb.mxu1 %v1502_v32  ;;  %764 = vmatpush.bf16.msra.mxu3 %v1493_v33 }
 0x175   :  { %v451_v39 = vadd.f32 %v449_v35, %v443_v37  ;;  %v1501_v35 = vld [vmem:[%s2116_s2 + $0xa8] sm:$0xff]  ;;  %v1492_v37 = vld [vmem:[%s2116_s2 + $0x60] sm:$0xff] }
 0x177   :  { %v459_v44 = vadd.f32 %v457_v31, %v451_v39  ;;  %v1486_v31 = vld [vmem:[%s2116_s2 + $0x30] sm:$0xff] }
 0x178   :  { %830 = vmatpush.bf16.msrb.mxu0 %v1486_v31  ;;  %1505 = vmatpush.bf16.msrb.mxu2 %v1486_v31 }
 0x179   :  { %v469_v43 = vpop.permute.xlu1 %468  ;;  %917 = vmatpush.bf16.msrb.mxu1 %v1501_v35  ;;  %765 = vmatpush.bf16.msra.mxu3 %v1492_v37 }
 0x17a   :  { %v471_v47 = vadd.f32 %v469_v43, %v463_v41  ;;  %v465_v49 = vpop.permute.xlu0 %464  ;;  %v1484_v41 = vld [vmem:[%s2116_s2 + $0x20] sm:$0xff] }
 0x17b   :  { %v467_v52 = vadd.f32 %v465_v49, %v459_v44  ;;  %v1500_v43 = vld [vmem:[%s2116_s2 + $0xa0] sm:$0xff]  ;;  %v1491_v44 = vld [vmem:[%s2116_s2 + $0x58] sm:$0xff] }
 0x17c   :  { %v483_v53 = vmul.f32 %v1762_v42, %v471_v47  ;;  %831 = vmatpush.bf16.msrb.mxu0 %v1485_v34  ;;  %1506 = vmatpush.bf16.msrb.mxu2 %v1485_v34  ;;  %v1483_v47 = vld [vmem:[%s2116_s2 + $0x18] sm:$0xff] }
 0x17d   :  { %v475_v54 = vadd.f32 %v473_v45, %v467_v52  ;;  %918 = vmatpush.bf16.msrb.mxu1 %v1500_v43  ;;  %766 = vmatpush.bf16.msra.mxu3 %v1491_v44  ;;  %v1499_v52 = vld [vmem:[%s2116_s2 + $0x98] sm:$0xff] }
 0x17e   :  { %v485_v50 = vmul.f32 %v483_v53, %v483_v53 }
 0x17f   :  { %v484_v55 = vmul.f32 %v1762_v42, %v475_v54 }
 0x180   :  { %832 = vmatpush.bf16.msrb.mxu0 %v1484_v41  ;;  %1507 = vmatpush.bf16.msrb.mxu2 %v1484_v41 }
 0x181   :  { %v486_v57 = vsub.f32 %v484_v55, %v485_v50  ;;  %919 = vmatpush.bf16.msrb.mxu1 %v1499_v52 }
 0x183   :  { %v487_v56 = vadd.f32 1e-05, %v486_v57  ;;  %v1482_v57 = vld [vmem:[%s2116_s2 + $0x10] sm:$0xff] }
 0x184   :  { %833 = vmatpush.bf16.msrb.mxu0 %v1483_v47  ;;  %1508 = vmatpush.bf16.msrb.mxu2 %v1483_v47 }
 0x185   :  { %1531 = vrsqrt.f32 %v487_v56  ;;  %vm494_vm9 = vweird.f32 %v487_v56 }
 0x188   :  { %834 = vmatpush.bf16.msrb.mxu0 %v1482_v57  ;;  %1509 = vmatpush.bf16.msrb.mxu2 %v1482_v57 }
 0x18b   :  { %v1532_v58 = vpop.eup %1531 }
 0x18c   :  { %v489_v59 = vmul.f32 %v1532_v58, %v487_v56  ;;  %vm495_vm8 = vweird.f32 %v1532_v58  ;;  %v1498_v56 = vld [vmem:[%s2116_s2 + $0x90] sm:$0xff] }
 0x18d   :  { %vm496_vm10 = vmor %vm494_vm9, %vm495_vm8  ;;  %vm560_vm8 = vcmask 457728   ;;  %920 = vmatpush.bf16.msrb.mxu1 %v1498_v56  ;;  %vm563_vm9 = vcmask 588800  }
 0x18e   :  { %v490_v51 = vmul.f32 %v1532_v58, %v489_v59 }
 0x190   :  { %v491_v60 = vmul.f32 0.5, %v490_v51 }
 0x192   :  { %v492_v61 = vsub.f32 1.5, %v491_v60 }
 0x194   :  { %v493_v63 = vmul.f32 %v1532_v58, %v492_v61  ;;  %v1481_v61 = vld [vmem:[%s2116_s2 + $0x8] sm:$0xff] }
 0x195   :  { %835 = vmatpush.bf16.msrb.mxu0 %v1481_v61  ;;  %1510 = vmatpush.bf16.msrb.mxu2 %v1481_v61 }
 0x196   :  { %v497_v0 = vsel %vm496_vm10, %v1532_v58, %v493_v63  ;;  %v1489_v58 = vld [vmem:[%s2116_s2 + $0x48] sm:$0xff]  ;;  %vm565_vm10 = vcmask 654336  }
 0x197   :  { %v1769_v1 = vmul.f32 %v497_v0, %v330_v62  ;;  %v1497_v62 = vld [vmem:[%s2116_s2 + $0x88] sm:$0xff] }
 0x198   :  { %921 = vmatpush.bf16.msrb.mxu1 %v1497_v62 }
 0x199   :  { %v502_v2 = vperm.slane %v1769_v1, 0  ;;  %v499_v3 = vmul.f32 %v1769_v1, %v483_v53  ;;  %v1490_v53 = vld [vmem:[%s2116_s2 + $0x50] sm:$0xff] }
 0x19a   :  { %767 = vmatpush.bf16.msra.mxu3 %v1490_v53 }
 0x19b   :  { %509 = vrot.lane.b32.xlu2 %v502_v2, %s1548_s21  ;;  %506 = vrot.lane.b32.xlu1 %v502_v2, %s1547_s20  ;;  %v1791_v7 = vsub.f32 %v331_v5, %v499_v3 }
 0x19c   :  { %503 = vrot.lane.b32.xlu0 %v502_v2, %s1549_s22 }
 0x19d   :  { %v578_v8 = vperm.slane %v1791_v7, 0 }
 0x19e   :  { %768 = vmatpush.bf16.msra.mxu3 %v1489_v58 }
 0x1a3   :  { %518 = vrot.lane.b32.xlu2 %v502_v2, %s1546_s19  ;;  %512 = vrot.lane.b32.xlu1 %v502_v2, %s1545_s18 }
 0x1a4   :  { %515 = vrot.lane.b32.xlu0 %v502_v2, %s1544_s17 }
 0x1ab   :  { %527 = vrot.lane.b32.xlu2 %v502_v2, %s1543_s16  ;;  %521 = vrot.lane.b32.xlu1 %v502_v2, %s1542_s15 }
 0x1ac   :  { %524 = vrot.lane.b32.xlu0 %v502_v2, %s1541_s14 }
 0x1b3   :  { %536 = vrot.lane.b32.xlu2 %v502_v2, %s1540_s13  ;;  %530 = vrot.lane.b32.xlu1 %v502_v2, %s1539_s12 }
 0x1b4   :  { %533 = vrot.lane.b32.xlu0 %v502_v2, %s1538_s11 }
 0x1bb   :  { %545 = vrot.lane.b32.xlu2 %v502_v2, %s1537_s10  ;;  %539 = vrot.lane.b32.xlu1 %v502_v2, %s1535_s0 }
 0x1bc   :  { %542 = vrot.lane.b32.xlu0 %v502_v2, %s1536_s9 }
 0x1c3   :  { %585 = vrot.lane.b32.xlu1 %v578_v8, %s1548_s21  ;;  %582 = vrot.lane.b32.xlu2 %v578_v8, %s1547_s20 }
 0x1c4   :  { %579 = vrot.lane.b32.xlu0 %v578_v8, %s1549_s22 }
 0x1cb   :  { %594 = vrot.lane.b32.xlu1 %v578_v8, %s1546_s19  ;;  %591 = vrot.lane.b32.xlu2 %v578_v8, %s1544_s17 }
 0x1cc   :  { %588 = vrot.lane.b32.xlu0 %v578_v8, %s1545_s18 }
 0x1d3   :  { %603 = vrot.lane.b32.xlu1 %v578_v8, %s1543_s16  ;;  %600 = vrot.lane.b32.xlu2 %v578_v8, %s1541_s14 }
 0x1d4   :  { %597 = vrot.lane.b32.xlu0 %v578_v8, %s1542_s15 }
 0x1db   :  { %612 = vrot.lane.b32.xlu1 %v578_v8, %s1540_s13  ;;  %609 = vrot.lane.b32.xlu2 %v578_v8, %s1538_s11 }
 0x1dc   :  { %606 = vrot.lane.b32.xlu0 %v578_v8, %s1539_s12 }
 0x1e3   :  { %618 = vrot.lane.b32.xlu1 %v578_v8, %s1536_s9  ;;  %621 = vrot.lane.b32.xlu2 %v578_v8, %s1537_s10 }
 0x1e4   :  { %615 = vrot.lane.b32.xlu0 %v578_v8, %s1535_s0 }
 0x1f5   :  { %v510_v11 = vpop.permute.xlu2 %509 }
 0x1fd   :  { %v1809_v12 = vpop.permute.xlu2 %518 }
 0x205   :  { %v1811_v16 = vpop.permute.xlu2 %527 }
 0x20d   :  { %v507_v13 = vpop.permute.xlu1 %506  ;;  %v1815_v20 = vpop.permute.xlu2 %536 }
 0x20e   :  { %v504_v14 = vpop.permute.xlu0 %503 }
 0x20f   :  { %v549_v39 = vsel %vm2123_vm11, %v1769_v1, %v504_v14  ;;  %v1488_v1 = vld [vmem:[%s2116_s2 + $0x40] sm:$0xff] }
 0x210   :  { %v551_v49 = vsel %vm2121_vm12, %v549_v39, %v507_v13  ;;  %769 = vmatpush.bf16.msra.mxu3 %v1488_v1 }
 0x211   :  { %v553_v54 = vsel %vm2120_vm13, %v551_v49, %v510_v11  ;;  %v1480_v11 = vld [vmem:[%s2116_s2] sm:$0xff] }
 0x212   :  { %836 = vmatpush.bf16.msrb.mxu0 %v1480_v11  ;;  %1511 = vmatpush.bf16.msrb.mxu2 %v1480_v11 }
 0x215   :  { %v513_v18 = vpop.permute.xlu1 %512  ;;  %v1835_v29 = vpop.permute.xlu2 %545 }
 0x216   :  { %v1813_v19 = vpop.permute.xlu0 %515  ;;  %v555_v55 = vsel %vm2122_vm14, %v553_v54, %v513_v18 }
 0x217   :  { %v557_v59 = vsel %vm2124_vm15, %v555_v55, %v1813_v19 }
 0x218   :  { %v559_v63 = vsel %vm558_vm7, %v557_v59, %v1809_v12  ;;  %v1496_v12 = vld [vmem:[%s2116_s2 + $0x80] sm:$0xff] }
 0x219   :  { %922 = vmatpush.bf16.msrb.mxu1 %v1496_v12 }
 0x21d   :  { %v1817_v21 = vpop.permute.xlu1 %521  ;;  %v583_v40 = vpop.permute.xlu2 %582 }
 0x21e   :  { %v1819_v22 = vpop.permute.xlu0 %524  ;;  %v561_v2 = vsel %vm560_vm8, %v559_v63, %v1817_v21 }
 0x225   :  { %v1830_v27 = vpop.permute.xlu1 %530  ;;  %v592_v51 = vpop.permute.xlu2 %591 }
 0x226   :  { %v1837_v30 = vpop.permute.xlu0 %533 }
 0x22d   :  { %v1854_v36 = vpop.permute.xlu1 %539  ;;  %v601_v18 = vpop.permute.xlu2 %600 }
 0x22e   :  { %v1859_v38 = vpop.permute.xlu0 %542 }
 0x235   :  { %v586_v45 = vpop.permute.xlu1 %585  ;;  %v610_v33 = vpop.permute.xlu2 %609 }
 0x236   :  { %v580_v50 = vpop.permute.xlu0 %579 }
 0x237   :  { %v624_v60 = vsel %vm2123_vm11, %v1791_v7, %v580_v50  ;;  %v562_v7 = vsel %vm191_vm4, %v561_v2, %v1819_v22  ;;  %vm2126_vm11 = vcmask 916480  }
 0x238   :  { %v625_v3 = vsel %vm2121_vm12, %v624_v60, %v583_v40  ;;  %v564_v14 = vsel %vm563_vm9, %v562_v7, %v1811_v16  ;;  %vm569_vm12 = vcmask 785408  }
 0x239   :  { %v626_v8 = vsel %vm2120_vm13, %v625_v3, %v586_v45  ;;  %v566_v19 = vsel %vm565_vm10, %v564_v14, %v1830_v27  ;;  %vm567_vm13 = vcmask 719872  }
 0x23a   :  { %v568_v24 = vsel %vm567_vm13, %v566_v19, %v1837_v30 }
 0x23b   :  { %v570_v16 = vsel %vm569_vm12, %v568_v24, %v1815_v20 }
 0x23d   :  { %v595_v0 = vpop.permute.xlu1 %594  ;;  %v622_v47 = vpop.permute.xlu2 %621 }
 0x23e   :  { %v589_v5 = vpop.permute.xlu0 %588 }
 0x23f   :  { %v627_v13 = vsel %vm2122_vm14, %v626_v8, %v589_v5  ;;  %vm2127_vm14 = vcmask 850944  }
 0x240   :  { %v628_v21 = vsel %vm2124_vm15, %v627_v13, %v592_v51  ;;  %v572_v27 = vsel %vm2127_vm14, %v570_v16, %v1854_v36  ;;  %vm2125_vm15 = vcmask 982016  }
 0x241   :  { %v629_v26 = vsel %vm558_vm7, %v628_v21, %v595_v0  ;;  %v574_v30 = vsel %vm2126_vm11, %v572_v27, %v1859_v38 }
 0x242   :  { %v576_v20 = vsel %vm2125_vm15, %v574_v30, %v1835_v29 }
 0x243   :  { %v639_v36 = vperm.slane %v576_v20, 0 }
 0x245   :  { %v604_v22 = vpop.permute.xlu1 %603  ;;  %v642_v38 = vmul.f32 %v639_v36, %v1698_v10  ;;  %v643_v45 = vmul.f32 %v639_v36, %v1703_v15  ;;  %v640_v29 = vmul.f32 %v639_v36, %v1696_v9  ;;  %v641_v54 = vmul.f32 %v639_v36, %v1694_v6 }
 0x246   :  { %v598_v23 = vpop.permute.xlu0 %597 }
 0x247   :  { %v630_v28 = vsel %vm560_vm8, %v629_v26, %v598_v23 }
 0x248   :  { %v631_v31 = vsel %vm191_vm4, %v630_v28, %v601_v18 }
 0x249   :  { %v632_v35 = vsel %vm563_vm9, %v631_v31, %v604_v22 }
 0x24d   :  { %v613_v32 = vpop.permute.xlu1 %612 }
 0x24e   :  { %v607_v34 = vpop.permute.xlu0 %606 }
 0x24f   :  { %v633_v37 = vsel %vm565_vm10, %v632_v35, %v607_v34 }
 0x250   :  { %v634_v39 = vsel %vm567_vm13, %v633_v37, %v610_v33 }
 0x251   :  { %v635_v41 = vsel %vm569_vm12, %v634_v39, %v613_v32 }
 0x255   :  { %v619_v40 = vpop.permute.xlu1 %618 }
 0x256   :  { %v616_v43 = vpop.permute.xlu0 %615 }
 0x257   :  { %v636_v44 = vsel %vm2127_vm14, %v635_v41, %v616_v43 }
 0x258   :  { %v637_v49 = vsel %vm2126_vm11, %v636_v44, %v619_v40 }
 0x259   :  { %v638_v52 = vsel %vm2125_vm15, %v637_v49, %v622_v47  ;;  %vm1551_vm15 = vmmov 1  }
 0x25a   :  { %v644_v53 = vperm.slane %v638_v52, 0  ;;  %vm1406_vm11 = vmpackc.low %vm1551_vm15, %vm1627_vm1 }
 0x25b   :  { %vm1409_vm14 = vmpackc.low %vm1551_vm15, %vm1668_vm5 }
 0x25c   :  { %v647_v50 = vadd.f32 %v644_v53, %v642_v38  ;;  %v648_v55 = vadd.f32 %v644_v53, %v643_v45  ;;  %v645_v57 = vadd.f32 %v644_v53, %v640_v29  ;;  %v646_v56 = vadd.f32 %v644_v53, %v641_v54  ;;  %vm1460_vm1 = vmpackc.low %vm1635_vm3, %vm1551_vm15 }
 0x25e   :  { %v651_v58 = vmax.f32 %v647_v50, 0.0  ;;  %v652_v59 = vmax.f32 %v648_v55, 0.0  ;;  %v649_v51 = vmax.f32 %v645_v57, 0.0  ;;  %v650_v60 = vmax.f32 %v646_v56, 0.0 }
 0x260   :  { %v653_v61 = vrot.slane %v649_v51, 7  ;;  %v654_v62 = vrot.slane %v650_v60, 7  ;;  %v665_v10 = vrot.slane %v649_v51, 1  ;;  %v666_v63 = vrot.slane %v650_v60, 1 }
 0x261   :  { %v695_v0 = vpack.c.bf16 %v650_v60, %v649_v51  ;;  %v656_v1 = vrot.slane %v652_v59, 7  ;;  %v655_v15 = vrot.slane %v651_v58, 7  ;;  %v667_v2 = vrot.slane %v651_v58, 1 }
 0x262   :  { %v659_v9 = vsel %vm96_vm0, %v653_v61, %v654_v62  ;;  %v671_v6 = vsel %vm121_vm2, %v665_v10, %v666_v63  ;;  %v668_v13 = vrot.slane %v652_v59, 1  ;;  %v696_v14 = vpack.c.bf16 %v652_v59, %v651_v58 }
 0x263   :  { %770 = vmatmul.bf16.vlgmr.msra.gmra.mxu3 %v695_v0  ;;  %v660_v3 = vsel %vm96_vm0, %v656_v1, %v653_v61  ;;  %v657_v5 = vsel %vm96_vm0, %v655_v15, %v656_v1  ;;  %v658_v7 = vsel %vm96_vm0, %v654_v62, %v655_v15  ;;  %v670_v17 = vsel %vm121_vm2, %v666_v63, %v667_v2  ;;  %vm1463_vm0 = vmpackc.low %vm1674_vm6, %vm1551_vm15 }
 0x264   :  { %v1407_v8 = vpack.c.bf16 %v659_v9, %v660_v3  ;;  %v1410_v11 = vpack.c.bf16 %v657_v5, %v658_v7  ;;  %v1461_v12 = vpack.c.bf16 %v670_v17, %v671_v6  ;;  %v669_v46 = vsel %vm121_vm2, %v667_v2, %v668_v13 }
 0x265   :  { %v672_v18 = vsel %vm121_vm2, %v668_v13, %v665_v10  ;;  %vm2136_vm6 = vcmask 64512   ;;  %vm2139_vm15 = vcmask 261120  }
 0x266   :  { %1408 = vmatmul.msk.bf16.vlgmr.msrb.gmra.mxu0 %vm1406_vm11, %v1407_v8  ;;  %1411 = vmatmul.msk.bf16.vlgmr.msrb.gmra.mxu2 %vm1409_vm14, %v1410_v11  ;;  %v1464_v19 = vpack.c.bf16 %v672_v18, %v669_v46  ;;  %vm2137_vm11 = vcmask 130048   ;;  %vm2138_vm14 = vcmask 195584  }
 0x267   :  { %1462 = vmatmul.msk.bf16.vlgmr.msrb.gmra.mxu1 %vm1460_vm1, %v1461_v12  ;;  %vm2140_vm1 = vcmask 326656  }
 0x273   :  { %775 = vmatmul.bf16.gmra.mxu3 %v696_v14 }
 0x277   :  { %1465 = vmatmul.msk.bf16.gmra.mxu1 %vm1463_vm0, %v1464_v19  ;;  %vm2141_vm0 = vmmov %vm2136_vm6 }
 0x2e3   :  { %v838_v22 = vpop.f32.mrf.mxu0 }
 0x2e4   :  { %v924_v25 = vpop.f32.mrf.mxu1 }
 0x2e6   :  { %v771_v21 = vpop.f32.mrf.mxu3 }
 0x2e7   :  { %v839_v32 = vadd.f32 %v838_v22, %v771_v21 }
 0x2e9   :  { %v843_v26 = vpop.f32.mrf.mxu2  ;;  %v1980_v34 = vadd.f32 %v924_v25, %v839_v32 }
 0x2eb   :  { %v840_v28 = vpop.f32.mrf.mxu0  ;;  %v949_v53 = vmul.f32 %v1980_v34, %v1980_v34 }
 0x2ec   :  { %v926_v23 = vpop.f32.mrf.mxu1 }
 0x2ee   :  { %v773_v24 = vpop.f32.mrf.mxu3 }
 0x2ef   :  { %v841_v31 = vadd.f32 %v840_v28, %v773_v24 }
 0x2f1   :  { %v1978_v33 = vadd.f32 %v926_v23, %v841_v31  ;;  %v845_v30 = vpop.f32.mrf.mxu2 }
 0x2f3   :  { %v940_v37 = vadd.f32 %v1978_v33, %v1980_v34  ;;  %v950_v52 = vmul.f32 %v1978_v33, %v1978_v33 }
 0x2f4   :  { %v929_v16 = vpop.f32.mrf.mxu1 }
 0x2f5   :  { %v953_v54 = vadd.f32 %v950_v52, %v949_v53 }
 0x2f6   :  { %v776_v27 = vpop.f32.mrf.mxu3 }
 0x2f7   :  { %v844_v4 = vadd.f32 %v843_v26, %v776_v27 }
 0x2f9   :  { %v1982_v48 = vadd.f32 %v929_v16, %v844_v4 }
 0x2fb   :  { %v941_v36 = vadd.f32 %v940_v37, %v1982_v48  ;;  %v951_v29 = vmul.f32 %v1982_v48, %v1982_v48 }
 0x2fc   :  { %v931_v39 = vpop.f32.mrf.mxu1 }
 0x2fd   :  { %v954_v55 = vadd.f32 %v953_v54, %v951_v29 }
 0x2fe   :  { %v778_v35 = vpop.f32.mrf.mxu3 }
 0x2ff   :  { %v846_v20 = vadd.f32 %v845_v30, %v778_v35 }
 0x301   :  { %v1987_v40 = vadd.f32 %v931_v39, %v846_v20 }
 0x303   :  { %v942_v41 = vadd.f32 %v941_v36, %v1987_v40  ;;  %v952_v50 = vmul.f32 %v1987_v40, %v1987_v40 }
 0x305   :  { %v943_v43 = vrot.slane %v942_v41, 4  ;;  %v955_v57 = vadd.f32 %v954_v55, %v952_v50 }
 0x307   :  { %v944_v44 = vadd.f32 %v943_v43, %v942_v41  ;;  %v956_v56 = vrot.slane %v955_v57, 4 }
 0x309   :  { %v945_v47 = vrot.slane %v944_v44, 2  ;;  %v957_v58 = vadd.f32 %v956_v56, %v955_v57 }
 0x30b   :  { %v946_v49 = vadd.f32 %v945_v47, %v944_v44  ;;  %v958_v59 = vrot.slane %v957_v58, 2 }
 0x30d   :  { %v947_v38 = vrot.slane %v946_v49, 1  ;;  %v959_v51 = vadd.f32 %v958_v59, %v957_v58 }
 0x30f   :  { %v948_v45 = vadd.f32 %v947_v38, %v946_v49  ;;  %v960_v60 = vrot.slane %v959_v51, 1 }
 0x311   :  { %980 = vrot.lane.b32.xlu1 %v948_v45, %s1535_s0  ;;  %972 = vrot.lane.b32.xlu2 %v948_v45, %s1536_s9  ;;  %v961_v61 = vadd.f32 %v960_v60, %v959_v51 }
 0x312   :  { %963 = vrot.lane.b32.xlu0 %v948_v45, %s1537_s10 }
 0x319   :  { %1004 = vrot.lane.b32.xlu1 %v948_v45, %s1539_s12  ;;  %996 = vrot.lane.b32.xlu2 %v948_v45, %s1538_s11 }
 0x31a   :  { %988 = vrot.lane.b32.xlu0 %v948_v45, %s1540_s13 }
 0x321   :  { %1028 = vrot.lane.b32.xlu1 %v948_v45, %s1542_s15  ;;  %1020 = vrot.lane.b32.xlu2 %v948_v45, %s1541_s14 }
 0x322   :  { %1012 = vrot.lane.b32.xlu0 %v948_v45, %s1543_s16 }
 0x329   :  { %1052 = vrot.lane.b32.xlu1 %v948_v45, %s1545_s18  ;;  %1044 = vrot.lane.b32.xlu2 %v948_v45, %s1544_s17 }
 0x32a   :  { %1036 = vrot.lane.b32.xlu0 %v948_v45, %s1546_s19 }
 0x331   :  { %968 = vrot.lane.b32.xlu1 %v961_v61, %s1537_s10  ;;  %1068 = vrot.lane.b32.xlu2 %v948_v45, %s1547_s20 }
 0x332   :  { %1060 = vrot.lane.b32.xlu0 %v948_v45, %s1548_s21 }
 0x339   :  { %992 = vrot.lane.b32.xlu1 %v961_v61, %s1540_s13  ;;  %984 = vrot.lane.b32.xlu2 %v961_v61, %s1535_s0 }
 0x33a   :  { %976 = vrot.lane.b32.xlu0 %v961_v61, %s1536_s9 }
 0x341   :  { %1016 = vrot.lane.b32.xlu1 %v961_v61, %s1543_s16  ;;  %1008 = vrot.lane.b32.xlu2 %v961_v61, %s1539_s12 }
 0x342   :  { %1000 = vrot.lane.b32.xlu0 %v961_v61, %s1538_s11 }
 0x349   :  { %1040 = vrot.lane.b32.xlu1 %v961_v61, %s1546_s19  ;;  %1032 = vrot.lane.b32.xlu2 %v961_v61, %s1542_s15 }
 0x34a   :  { %1024 = vrot.lane.b32.xlu0 %v961_v61, %s1541_s14 }
 0x351   :  { %1064 = vrot.lane.b32.xlu1 %v961_v61, %s1548_s21  ;;  %1056 = vrot.lane.b32.xlu2 %v961_v61, %s1545_s18 }
 0x352   :  { %1048 = vrot.lane.b32.xlu0 %v961_v61, %s1544_s17 }
 0x359   :  { %1076 = vrot.lane.b32.xlu1 %v948_v45, %s1549_s22  ;;  %1080 = vrot.lane.b32.xlu2 %v961_v61, %s1549_s22 }
 0x35a   :  { %1072 = vrot.lane.b32.xlu0 %v961_v61, %s1547_s20 }
 0x36b   :  { %v973_v62 = vpop.permute.xlu2 %972 }
 0x373   :  { %v997_v10 = vpop.permute.xlu2 %996 }
 0x37b   :  { %v1021_v1 = vpop.permute.xlu2 %1020 }
 0x383   :  { %v981_v63 = vpop.permute.xlu1 %980  ;;  %v1045_v9 = vpop.permute.xlu2 %1044 }
 0x384   :  { %v964_v0 = vpop.permute.xlu0 %963 }
 0x385   :  { %v966_v8 = vadd.f32 %v964_v0, %v948_v45 }
 0x387   :  { %v975_v11 = vadd.f32 %v973_v62, %v966_v8 }
 0x389   :  { %v983_v14 = vadd.f32 %v981_v63, %v975_v11 }
 0x38b   :  { %v1005_v15 = vpop.permute.xlu1 %1004  ;;  %v1069_v7 = vpop.permute.xlu2 %1068 }
 0x38c   :  { %v989_v2 = vpop.permute.xlu0 %988 }
 0x38d   :  { %v991_v18 = vadd.f32 %v989_v2, %v983_v14 }
 0x38f   :  { %v999_v21 = vadd.f32 %v997_v10, %v991_v18 }
 0x391   :  { %v1007_v26 = vadd.f32 %v1005_v15, %v999_v21 }
 0x393   :  { %v1029_v6 = vpop.permute.xlu1 %1028  ;;  %v985_v46 = vpop.permute.xlu2 %984 }
 0x394   :  { %v1013_v3 = vpop.permute.xlu0 %1012 }
 0x395   :  { %v1015_v16 = vadd.f32 %v1013_v3, %v1007_v26 }
 0x397   :  { %v1023_v30 = vadd.f32 %v1021_v1, %v1015_v16 }
 0x399   :  { %v1031_v37 = vadd.f32 %v1029_v6, %v1023_v30 }
 0x39b   :  { %v1053_v5 = vpop.permute.xlu1 %1052  ;;  %v1009_v28 = vpop.permute.xlu2 %1008 }
 0x39c   :  { %v1037_v17 = vpop.permute.xlu0 %1036 }
 0x39d   :  { %v1039_v41 = vadd.f32 %v1037_v17, %v1031_v37 }
 0x39f   :  { %v1047_v49 = vadd.f32 %v1045_v9, %v1039_v41 }
 0x3a1   :  { %v1055_v45 = vadd.f32 %v1053_v5, %v1047_v49 }
 0x3a3   :  { %v969_v12 = vpop.permute.xlu1 %968  ;;  %v1033_v20 = vpop.permute.xlu2 %1032 }
 0x3a4   :  { %v1061_v13 = vpop.permute.xlu0 %1060  ;;  %v971_v19 = vadd.f32 %v969_v12, %v961_v61 }
 0x3a5   :  { %v1063_v50 = vadd.f32 %v1061_v13, %v1055_v45  ;;  %v939_v13 = vld [vmem:[%s2118_s6] sm:$0x1] }
 0x3a7   :  { %v1071_v57 = vadd.f32 %v1069_v7, %v1063_v50  ;;  %v938_v7 = vld [vmem:[%s2117_s5] sm:$0x1] }
 0x3ab   :  { %v993_v25 = vpop.permute.xlu1 %992  ;;  %v1057_v53 = vpop.permute.xlu2 %1056 }
 0x3ac   :  { %v977_v22 = vpop.permute.xlu0 %976 }
 0x3ad   :  { %v979_v23 = vadd.f32 %v977_v22, %v971_v19 }
 0x3af   :  { %v987_v24 = vadd.f32 %v985_v46, %v979_v23 }
 0x3b1   :  { %v995_v31 = vadd.f32 %v993_v25, %v987_v24 }
 0x3b3   :  { %v1017_v27 = vpop.permute.xlu1 %1016  ;;  %v1081_v61 = vpop.permute.xlu2 %1080 }
 0x3b4   :  { %v1001_v32 = vpop.permute.xlu0 %1000 }
 0x3b5   :  { %v1003_v4 = vadd.f32 %v1001_v32, %v995_v31 }
 0x3b7   :  { %v1011_v35 = vadd.f32 %v1009_v28, %v1003_v4 }
 0x3b9   :  { %v1019_v36 = vadd.f32 %v1017_v27, %v1011_v35 }
 0x3bb   :  { %v1041_v39 = vpop.permute.xlu1 %1040 }
 0x3bc   :  { %v1025_v43 = vpop.permute.xlu0 %1024 }
 0x3bd   :  { %v1027_v44 = vadd.f32 %v1025_v43, %v1019_v36 }
 0x3bf   :  { %v1035_v47 = vadd.f32 %v1033_v20, %v1027_v44 }
 0x3c1   :  { %v1043_v52 = vadd.f32 %v1041_v39, %v1035_v47 }
 0x3c3   :  { %v1065_v38 = vpop.permute.xlu1 %1064 }
 0x3c4   :  { %v1049_v29 = vpop.permute.xlu0 %1048 }
 0x3c5   :  { %v1051_v54 = vadd.f32 %v1049_v29, %v1043_v52 }
 0x3c7   :  { %v1059_v55 = vadd.f32 %v1057_v53, %v1051_v54 }
 0x3c9   :  { %v1067_v58 = vadd.f32 %v1065_v38, %v1059_v55 }
 0x3cb   :  { %v1077_v56 = vpop.permute.xlu1 %1076 }
 0x3cc   :  { %v1079_v59 = vadd.f32 %v1077_v56, %v1071_v57  ;;  %v1073_v51 = vpop.permute.xlu0 %1072 }
 0x3cd   :  { %v1075_v60 = vadd.f32 %v1073_v51, %v1067_v58 }
 0x3ce   :  { %v1084_v62 = vmul.f32 %v1079_v59, %v1762_v42 }
 0x3cf   :  { %v1083_v10 = vadd.f32 %v1081_v61, %v1075_v60 }
 0x3d0   :  { %v1086_v63 = vmul.f32 %v1084_v62, %v1084_v62 }
 0x3d1   :  { %v1085_v0 = vmul.f32 %v1083_v10, %v1762_v42 }
 0x3d3   :  { %v1087_v1 = vsub.f32 %v1085_v0, %v1086_v63 }
 0x3d5   :  { %v1088_v15 = vadd.f32 1e-05, %v1087_v1 }
 0x3d7   :  { %1533 = vrsqrt.f32 %v1088_v15  ;;  %vm1095_vm3 = vweird.f32 %v1088_v15 }
 0x3dd   :  { %v1534_v2 = vpop.eup %1533 }
 0x3de   :  { %v1090_v9 = vmul.f32 %v1534_v2, %v1088_v15  ;;  %vm1096_vm2 = vweird.f32 %v1534_v2 }
 0x3df   :  { %vm1097_vm5 = vmor %vm1095_vm3, %vm1096_vm2 }
 0x3e0   :  { %v1091_v6 = vmul.f32 %v1534_v2, %v1090_v9  ;;  %vm2142_vm2 = vmmov %vm2137_vm11 }
 0x3e1   :  { %vm2143_vm3 = vmmov %vm2138_vm14 }
 0x3e2   :  { %v1092_v3 = vmul.f32 0.5, %v1091_v6 }
 0x3e4   :  { %v1093_v5 = vsub.f32 1.5, %v1092_v3 }
 0x3e6   :  { %v1094_v17 = vmul.f32 %v1534_v2, %v1093_v5 }
 0x3e8   :  { %v1098_v8 = vsel %vm1097_vm5, %v1534_v2, %v1094_v17  ;;  %vm2144_vm5 = vmmov %vm2139_vm15 }
 0x3e9   :  { %v1099_v11 = vmul.f32 %v1098_v8, %v938_v7 }
 0x3eb   :  { %v1103_v12 = vperm.slane %v1099_v11, 0  ;;  %v1100_v42 = vmul.f32 %v1099_v11, %v1084_v62 }
 0x3ed   :  { %1110 = vrot.lane.b32.xlu2 %v1103_v12, %s1548_s21  ;;  %1107 = vrot.lane.b32.xlu1 %v1103_v12, %s1547_s20  ;;  %v1101_v14 = vsub.f32 %v939_v13, %v1100_v42 }
 0x3ee   :  { %1104 = vrot.lane.b32.xlu0 %v1103_v12, %s1549_s22 }
 0x3ef   :  { %v1165_v46 = vperm.slane %v1101_v14, 0 }
 0x3f5   :  { %1119 = vrot.lane.b32.xlu2 %v1103_v12, %s1546_s19  ;;  %1116 = vrot.lane.b32.xlu1 %v1103_v12, %s1544_s17 }
 0x3f6   :  { %1113 = vrot.lane.b32.xlu0 %v1103_v12, %s1545_s18 }
 0x3fd   :  { %1128 = vrot.lane.b32.xlu2 %v1103_v12, %s1543_s16  ;;  %1125 = vrot.lane.b32.xlu1 %v1103_v12, %s1541_s14 }
 0x3fe   :  { %1122 = vrot.lane.b32.xlu0 %v1103_v12, %s1542_s15 }
 0x405   :  { %1137 = vrot.lane.b32.xlu2 %v1103_v12, %s1540_s13  ;;  %1140 = vrot.lane.b32.xlu1 %v1103_v12, %s1535_s0 }
 0x406   :  { %1131 = vrot.lane.b32.xlu0 %v1103_v12, %s1539_s12 }
 0x40d   :  { %1146 = vrot.lane.b32.xlu2 %v1103_v12, %s1537_s10  ;;  %1166 = vrot.lane.b32.xlu1 %v1165_v46, %s1549_s22 }
 0x40e   :  { %1134 = vrot.lane.b32.xlu0 %v1103_v12, %s1538_s11 }
 0x415   :  { %1169 = vrot.lane.b32.xlu2 %v1165_v46, %s1547_s20  ;;  %1175 = vrot.lane.b32.xlu1 %v1165_v46, %s1545_s18 }
 0x416   :  { %1143 = vrot.lane.b32.xlu0 %v1103_v12, %s1536_s9 }
 0x41d   :  { %1178 = vrot.lane.b32.xlu2 %v1165_v46, %s1544_s17  ;;  %1184 = vrot.lane.b32.xlu1 %v1165_v46, %s1542_s15 }
 0x41e   :  { %1172 = vrot.lane.b32.xlu0 %v1165_v46, %s1548_s21 }
 0x425   :  { %1187 = vrot.lane.b32.xlu2 %v1165_v46, %s1541_s14  ;;  %1190 = vrot.lane.b32.xlu1 %v1165_v46, %s1543_s16 }
 0x426   :  { %1181 = vrot.lane.b32.xlu0 %v1165_v46, %s1546_s19 }
 0x42d   :  { %1196 = vrot.lane.b32.xlu2 %v1165_v46, %s1538_s11  ;;  %1199 = vrot.lane.b32.xlu1 %v1165_v46, %s1540_s13 }
 0x42e   :  { %1193 = vrot.lane.b32.xlu0 %v1165_v46, %s1539_s12 }
 0x435   :  { %1208 = vrot.lane.b32.xlu2 %v1165_v46, %s1537_s10  ;;  %1205 = vrot.lane.b32.xlu1 %v1165_v46, %s1536_s9 }
 0x436   :  { %1202 = vrot.lane.b32.xlu0 %v1165_v46, %s1535_s0 }
 0x447   :  { %v1111_v18 = vpop.permute.xlu2 %1110 }
 0x44f   :  { %v1120_v19 = vpop.permute.xlu2 %1119 }
 0x457   :  { %v1129_v22 = vpop.permute.xlu2 %1128 }
 0x45f   :  { %v1108_v25 = vpop.permute.xlu1 %1107  ;;  %v1138_v26 = vpop.permute.xlu2 %1137 }
 0x460   :  { %v1105_v21 = vpop.permute.xlu0 %1104 }
 0x461   :  { %v1149_v37 = vsel %vm2136_vm6, %v1099_v11, %v1105_v21  ;;  %vm2145_vm6 = vmmov %vm2140_vm1 }
 0x462   :  { %v1150_v20 = vsel %vm2137_vm11, %v1149_v37, %v1108_v25  ;;  %vm2146_vm11 = vcmask 850944  }
 0x463   :  { %v1151_v41 = vsel %vm2138_vm14, %v1150_v20, %v1111_v18  ;;  %vm2147_vm14 = vcmask 916480  }
 0x467   :  { %v1117_v23 = vpop.permute.xlu1 %1116  ;;  %v1147_v31 = vpop.permute.xlu2 %1146 }
 0x468   :  { %v1114_v24 = vpop.permute.xlu0 %1113 }
 0x469   :  { %v1152_v43 = vsel %vm2139_vm15, %v1151_v41, %v1114_v24 }
 0x46a   :  { %v1153_v47 = vsel %vm2140_vm1, %v1152_v43, %v1117_v23 }
 0x46b   :  { %v1154_v45 = vsel %vm558_vm7, %v1153_v47, %v1120_v19 }
 0x46f   :  { %v1126_v28 = vpop.permute.xlu1 %1125  ;;  %v1170_v35 = vpop.permute.xlu2 %1169 }
 0x470   :  { %v1123_v16 = vpop.permute.xlu0 %1122 }
 0x471   :  { %v1155_v29 = vsel %vm560_vm8, %v1154_v45, %v1123_v16 }
 0x472   :  { %v1156_v50 = vsel %vm191_vm4, %v1155_v29, %v1126_v28 }
 0x473   :  { %v1157_v58 = vsel %vm563_vm9, %v1156_v50, %v1129_v22 }
 0x477   :  { %v1141_v27 = vpop.permute.xlu1 %1140  ;;  %v1179_v44 = vpop.permute.xlu2 %1178 }
 0x478   :  { %v1132_v32 = vpop.permute.xlu0 %1131 }
 0x479   :  { %v1158_v60 = vsel %vm565_vm10, %v1157_v58, %v1132_v32 }
 0x47f   :  { %v1167_v4 = vpop.permute.xlu1 %1166  ;;  %v1188_v57 = vpop.permute.xlu2 %1187 }
 0x480   :  { %v1135_v30 = vpop.permute.xlu0 %1134  ;;  %v1211_v49 = vsel %vm2141_vm0, %v1101_v14, %v1167_v4 }
 0x481   :  { %v1212_v53 = vsel %vm2142_vm2, %v1211_v49, %v1170_v35  ;;  %v1159_v62 = vsel %vm567_vm13, %v1158_v60, %v1135_v30 }
 0x482   :  { %v1160_v63 = vsel %vm569_vm12, %v1159_v62, %v1138_v26 }
 0x483   :  { %v1161_v15 = vsel %vm2146_vm11, %v1160_v63, %v1141_v27 }
 0x487   :  { %v1176_v39 = vpop.permute.xlu1 %1175  ;;  %v1197_v2 = vpop.permute.xlu2 %1196 }
 0x488   :  { %v1144_v36 = vpop.permute.xlu0 %1143 }
 0x489   :  { %v1162_v6 = vsel %vm2147_vm14, %v1161_v15, %v1144_v36 }
 0x48f   :  { %v1185_v38 = vpop.permute.xlu1 %1184  ;;  %v1209_v14 = vpop.permute.xlu2 %1208 }
 0x490   :  { %v1173_v52 = vpop.permute.xlu0 %1172 }
 0x491   :  { %v1213_v54 = vsel %vm2143_vm3, %v1212_v53, %v1173_v52 }
 0x492   :  { %v1214_v55 = vsel %vm2144_vm5, %v1213_v54, %v1176_v39 }
 0x493   :  { %v1215_v51 = vsel %vm2145_vm6, %v1214_v55, %v1179_v44 }
 0x497   :  { %v1191_v56 = vpop.permute.xlu1 %1190 }
 0x498   :  { %v1182_v59 = vpop.permute.xlu0 %1181 }
 0x499   :  { %v1216_v61 = vsel %vm558_vm7, %v1215_v51, %v1182_v59  ;;  %vm2148_vm7 = vcmask 982016  }
 0x49a   :  { %v1217_v10 = vsel %vm560_vm8, %v1216_v61, %v1185_v38  ;;  %v1163_v7 = vsel %vm2148_vm7, %v1162_v6, %v1147_v31  ;;  %vm2150_vm8 = vmmov %vm2147_vm14 }
 0x49b   :  { %v1218_v0 = vsel %vm191_vm4, %v1217_v10, %v1188_v57  ;;  %v1226_v8 = vperm.slane %v1163_v7, 0  ;;  %vm2149_vm4 = vmmov %vm2146_vm11 }
 0x49c   :  { %v1219_v3 = vsel %vm563_vm9, %v1218_v0, %v1191_v56  ;;  %vm2151_vm15 = vmmov %vm2148_vm7 }
 0x49d   :  { %v1227_v18 = vmul.f32 %v1226_v8, %v1980_v34  ;;  %v1228_v25 = vmul.f32 %v1226_v8, %v1978_v33  ;;  %v1229_v21 = vmul.f32 %v1226_v8, %v1982_v48  ;;  %v1230_v22 = vmul.f32 %v1226_v8, %v1987_v40 }
 0x49f   :  { %v1200_v1 = vpop.permute.xlu1 %1199 }
 0x4a0   :  { %v1194_v9 = vpop.permute.xlu0 %1193 }
 0x4a1   :  { %v1220_v5 = vsel %vm565_vm10, %v1219_v3, %v1194_v9 }
 0x4a2   :  { %v1221_v17 = vsel %vm567_vm13, %v1220_v5, %v1197_v2 }
 0x4a3   :  { %v1222_v12 = vsel %vm569_vm12, %v1221_v17, %v1200_v1 }
 0x4a7   :  { %v1206_v11 = vpop.permute.xlu1 %1205 }
 0x4a8   :  { %v1203_v42 = vpop.permute.xlu0 %1202 }
 0x4a9   :  { %v1223_v13 = vsel %vm2149_vm4, %v1222_v12, %v1203_v42 }
 0x4aa   :  { %v1224_v46 = vsel %vm2150_vm8, %v1223_v13, %v1206_v11 }
 0x4ab   :  { %v1225_v19 = vsel %vm2151_vm15, %v1224_v46, %v1209_v14 }
 0x4ac   :  { %v1231_v23 = vperm.slane %v1225_v19, 0 }
 0x4ae   :  { %v1232_v24 = vadd.f32 %v1231_v23, %v1227_v18  ;;  %v1233_v26 = vadd.f32 %v1231_v23, %v1228_v25  ;;  %v1234_v28 = vadd.f32 %v1231_v23, %v1229_v21  ;;  %v1235_v16 = vadd.f32 %v1231_v23, %v1230_v22 }
 0x4b0   :  { %v1236_v27 = vmax.f32 %v1232_v24, 0.0  ;;  %v1237_v31 = vmax.f32 %v1233_v26, 0.0  ;;  %v1238_v32 = vmax.f32 %v1234_v28, 0.0  ;;  %v1239_v4 = vmax.f32 %v1235_v16, 0.0 }
 0x4b2   :  { %1240 = vst [vmem:[%s2119_s7] sm:$0xff] %v1236_v27 }
 0x4b3   :  { %1241 = vst [vmem:[%s2119_s7 + $0x8] sm:$0xff] %v1237_v31 }
 0x4b4   :  { %1242 = vst [vmem:[%s2119_s7 + $0x10] sm:$0xff] %v1238_v32 }
 0x4b5   :  { %1243 = vst [vmem:[%s2119_s7 + $0x18] sm:$0xff] %v1239_v4 }

</bundles_post_ra>
